<compile_context>
chip_gen: v7x
topology: tpu7x:2x2x1
jax: 0.10.0
libtpu: 0.0.40
codegen_flags: <defaults>
</compile_context>

<pallas_src>
import math
import random

import jax
import jax.numpy as jnp
from jax import lax
from jax.experimental import pallas as pl
from jax.experimental.pallas import tpu as pltpu


# ---------------------------------------------------------------------------
# fused decoder kernel: whole decode loop, all layers, projection epilogue
# ---------------------------------------------------------------------------

def _make_decoder_kernel(L, J, H, B, N, steps):
    f32 = jnp.float32

    def kernel(tf_ref, sup_ref, inp_ref, h0_ref, *rest):
        w_refs = rest[:6 * L]            # per layer: wx_ru, wh_ru, b_ru, wx_c, wh_c, b_c
        pw_ref = rest[6 * L]             # (1, 1, H)   projection weight
        pb_ref = rest[6 * L + 1]         # (1, 1)      projection bias
        out_ref = rest[6 * L + 2]        # (steps, B, N) output (VMEM resident)

        # --- loop-invariant loads (HBM->VMEM happened once; these are hoisted) ---
        S = sup_ref[...]                                          # (J, N, N)
        Sb = [jnp.broadcast_to(S[j], (B, N, N)) for j in range(J)]
        pw = pw_ref[...]                                          # (1, 1, H)
        pb = pb_ref[...]                                          # (1, 1)
        Wl = []
        for l in range(L):
            Wl.append(tuple(w_refs[6 * l + k][...] for k in range(6)))
        h0 = h0_ref[...]                                          # (L, B, N, H)

        def mm(a, w):
            # (B,N,D) x (D,C) -> (B,N,C): single matmul with M = B*N collapsed.
            return jnp.einsum('bnd,dc->bnc', a, w, preferred_element_type=f32)

        def gate(x, h_term, wx, wh, b, din):
            # sum_j S_j @ (x @ Wx_j + h_term @ Wh_j) + b
            acc = None
            for j in range(J):
                if din == 1:
                    zx = x * wx[j][None]          # (B,N,1) * (1,1,C) lane broadcast
                else:
                    zx = mm(x, wx[j])
                z = zx + mm(h_term, wh[j])        # (B, N, C)
                d = jnp.einsum('bkm,bmc->bkc', Sb[j], z,
                               preferred_element_type=f32)
                acc = d if acc is None else acc + d
            return acc + b

        def cell(l, x, h):
            wx_ru, wh_ru, b_ru, wx_c, wh_c, b_c = Wl[l]
            din = wx_ru.shape[1]
            ru = gate(x, h, wx_ru, wh_ru, b_ru, din)      # (B, N, 2H)
            r = jax.nn.sigmoid(ru[..., :H])
            u = jax.nn.sigmoid(ru[..., H:])
            c = jnp.tanh(gate(x, r * h, wx_c, wh_c, b_c, din))
            return u * h + (1.0 - u) * c

        def step(s, carry):
            hs, prev = carry                               # hs: tuple of L (B,N,H)
            x_seq = inp_ref[s]                             # (B, N) ground-truth frame
            tf = tf_ref[jnp.maximum(s - 1, 0)]             # draw made at end of step s-1
            use_seq = jnp.logical_or(s == 0, tf > 0)
            x_frame = jnp.where(use_seq, x_seq, prev)      # (B, N)
            x = x_frame[:, :, None]                        # (B, N, 1) layer-0 input

            new_hs = []
            for l in range(L):
                h_new = cell(l, x, hs[l])
                new_hs.append(h_new)
                x = h_new                                  # input to next layer

            # fused H->1 projection: VPU multiply + lane reduction (no 1-wide matmul)
            out_frame = jnp.sum(new_hs[-1] * pw, axis=-1) + pb     # (B, N)
            out_ref[s] = out_frame
            return tuple(new_hs), out_frame

        init = (tuple(h0[l] for l in range(L)), jnp.zeros((B, N), f32))
        lax.fori_loop(0, steps, step, init)

    return kernel


# ---------------------------------------------------------------------------
# DCRNNDecoder.forward — a single pallas_call for the whole decode
# ---------------------------------------------------------------------------

def dcrnn_decoder_forward(cells, supports, inp, init_hidden, teacher_force_ratio):
    """inp: (B, T, N, 1); init_hidden: (L, B, N, H) -> (B, T-1, N, 1)."""
    B, T, N, _ = inp.shape
    L = len(cells)
    H = init_hidden.shape[-1]
    J = supports.shape[0]
    steps = T - 1
    assert steps >= 1

    # Host-side teacher-forcing draws, exactly like the reference's per-step
    # random.random().  NOTE: do not jit this wrapper, or the draws freeze
    # into compile-time constants (differs from the torch per-call behaviour).
    tf_mask = jnp.asarray(
        [1 if random.random() < teacher_force_ratio else 0 for _ in range(steps)],
        dtype=jnp.int32)

    # lane-dense (T, B, N) input frames
    inp_tbn = jnp.transpose(inp[..., 0], (1, 0, 2)).astype(jnp.float32)

    flat = []
    for lyr in cells:
        c = lyr['cell']
        flat += [c['wx_ru'], c['wh_ru'], c['b_ru'], c['wx_c'], c['wh_c'], c['b_c']]
    proj = cells[-1]['proj']
    flat += [proj['w'], proj['b']]

    vmem = pltpu.MemorySpace.VMEM
    smem = pltpu.MemorySpace.SMEM
    in_specs = ([pl.BlockSpec(memory_space=smem)]                      # tf mask
                + [pl.BlockSpec(memory_space=vmem)] * (3 + len(flat)))
    out_specs = pl.BlockSpec(memory_space=vmem)

    def padded_bytes(shape, itemsize=4):
        s = list(shape)
        while len(s) < 2:
            s = [1] + s
        s[-1] = -(-s[-1] // 128) * 128
        s[-2] = -(-s[-2] // 8) * 8
        n = 1
        for d in s:
            n *= d
        return n * itemsize

    vmem_need = sum(padded_bytes(a.shape, a.dtype.itemsize)
                    for a in [supports, inp_tbn, init_hidden] + flat)
    vmem_need += padded_bytes((steps, B, N)) + padded_bytes((L, B, N, H))
    vmem_limit = int(min(max(16 * 2 ** 20, 4 * vmem_need + (2 << 20)), 48 * 2 ** 20))

    fn = pl.pallas_call(
        _make_decoder_kernel(L=L, J=J, H=H, B=B, N=N, steps=steps),
        out_shape=jax.ShapeDtypeStruct((steps, B, N), jnp.float32),
        in_specs=in_specs,
        out_specs=out_specs,
        compiler_params=pltpu.CompilerParams(vmem_limit_bytes=vmem_limit),
    )
    out_sbn = fn(tf_mask, supports.astype(jnp.float32), inp_tbn,
                 init_hidden.astype(jnp.float32), *flat)
    return jnp.transpose(out_sbn, (1, 0, 2))[:, :, :, None]      # (B, T-1, N, 1)


# ---------------------------------------------------------------------------
# deterministic synthetic parameters (mirrors the xavier_normal_(gain=1.414) /
# zero-bias init of the torch module), pre-split into x-/h- parts per support
# and with the r|u gates stacked along the output width.
# ---------------------------------------------------------------------------

def _xavier_normal_3d(key, shape, gain=1.414):
    j, d, h = shape                     # torch fan convention for (J, Din+H, H)
    fan_in = d * h
    fan_out = j * h
    std = gain * math.sqrt(2.0 / (fan_in + fan_out))
    return std * jax.random.normal(key, shape, dtype=jnp.float32)


def init_dcgru_cell(key, num_supports, input_size, hidden, need_proj=False):
    kr, kc, ku, kp = jax.random.split(key, 4)
    D = input_size + hidden
    w_r = _xavier_normal_3d(kr, (num_supports, D, hidden))
    w_c = _xavier_normal_3d(kc, (num_supports, D, hidden))
    w_u = _xavier_normal_3d(ku, (num_supports, D, hidden))
    cell = {
        'wx_ru': jnp.concatenate([w_r[:, :input_size], w_u[:, :input_size]], axis=-1),
        'wh_ru': jnp.concatenate([w_r[:, input_size:], w_u[:, input_size:]], axis=-1),
        'b_ru': jnp.zeros((1, 1, 2 * hidden), jnp.float32),
        'wx_c': w_c[:, :input_size],
        'wh_c': w_c[:, input_size:],
        'b_c': jnp.zeros((1, 1, hidden), jnp.float32),
    }
    proj_params = None
    if need_proj:
        bound = 1.0 / math.sqrt(hidden)
        kw, kb = jax.random.split(kp)
        proj_params = {
            'w': jax.random.uniform(kw, (1, 1, hidden), jnp.float32, -bound, bound),
            'b': jax.random.uniform(kb, (1, 1), jnp.float32, -bound, bound),
        }
    return {'cell': cell, 'proj': proj_params, 'input_size': input_size}


def init_dcrnn_decoder(key, num_supports, hidden_size, num_layers):
    keys = jax.random.split(key, num_layers)
    layers = [init_dcgru_cell(keys[0], num_supports, 1, hidden_size)]
    for i in range(1, num_layers - 1):
        layers.append(init_dcgru_cell(keys[i], num_supports, hidden_size, hidden_size))
    layers.append(init_dcgru_cell(keys[num_layers - 1], num_supports,
                                  hidden_size, hidden_size, need_proj=True))
    return layers


# ---------------------------------------------------------------------------
# pure-JAX reference (same split-weight math, same teacher-forcing draws)
# ---------------------------------------------------------------------------

def _reference_forward(cells, supports, inp, init_hidden, tf_draws):
    B, T, N, _ = inp.shape
    L = len(cells)
    H = init_hidden.shape[-1]
    J = supports.shape[0]

    def graph_conv(wx, wh, b, x, h):
        out = 0.0
        for j in range(J):
            z = x @ wx[j] + h @ wh[j]
            out = out + jnp.einsum('km,bmc->bkc', supports[j], z)
        return out + b

    h = [init_hidden[l] for l in range(L)]
    cur = inp[:, 0]                                     # (B, N, 1)
    outs = []
    for s in range(T - 1):
        x = cur
        for l in range(L):
            c_ = cells[l]['cell']
            ru = graph_conv(c_['wx_ru'], c_['wh_ru'], c_['b_ru'], x, h[l])
            r = jax.nn.sigmoid(ru[..., :H])
            u = jax.nn.sigmoid(ru[..., H:])
            cc = jnp.tanh(graph_conv(c_['wx_c'], c_['wh_c'], c_['b_c'], x, r * h[l]))
            h[l] = u * h[l] + (1.0 - u) * cc
            x = h[l]
        proj = cells[-1]['proj']
        o = (jnp.einsum('bnh,h->bn', x, proj['w'][0, 0]) + proj['b'][0, 0])[..., None]
        outs.append(o)
        cur = inp[:, s + 1] if tf_draws[s] else o
    return jnp.stack(outs, axis=1)


if __name__ == "__main__":
    key = jax.random.PRNGKey(0)
    B, T, N, H, J, L = 2, 8, 16, 32, 2, 2

    k_sup, k_in, k_hid, k_par = jax.random.split(key, 4)

    # synthetic row-normalized random-walk diffusion supports (J, N, N)
    raw = jax.random.uniform(k_sup, (J, N, N), jnp.float32, 0.0, 1.0)
    supports = raw / jnp.sum(raw, axis=-1, keepdims=True)

    inp = jax.random.normal(k_in, (B, T, N, 1), jnp.float32)
    init_hidden = 0.1 * jax.random.normal(k_hid, (L, B, N, H), jnp.float32)
    cells = init_dcrnn_decoder(k_par, J, H, L)

    ratio = 0.5
    random.seed(0)
    out = dcrnn_decoder_forward(cells, supports, inp, init_hidden, ratio)
    out = jax.block_until_ready(out)

    assert out.shape == (B, T - 1, N, 1), out.shape
    assert bool(jnp.all(jnp.isfinite(out)))

    # cross-check against a pure-JAX reference with identical teacher-forcing draws
    random.seed(0)
    draws = [random.random() < ratio for _ in range(T - 1)]
    ref = _reference_forward(cells, supports, inp, init_hidden, draws)
    err = float(jnp.max(jnp.abs(out - ref)))
    assert jnp.allclose(out, ref, atol=1e-3, rtol=1e-3), err

    print("KERNEL_OK")
</pallas_src>

<mosaic_0001>
module attributes {stable_mosaic.version = 11 : i64} {
  func.func @kernel(%arg0: memref<7xi32, #tpu.memory_space<smem>>, %arg1: memref<2x16x16xf32, #tpu.memory_space<vmem>>, %arg2: memref<8x2x16xf32, #tpu.memory_space<vmem>>, %arg3: memref<2x2x16x32xf32, #tpu.memory_space<vmem>>, %arg4: memref<2x1x64xf32, #tpu.memory_space<vmem>>, %arg5: memref<2x32x64xf32, #tpu.memory_space<vmem>>, %arg6: memref<1x1x64xf32, #tpu.memory_space<vmem>>, %arg7: memref<2x1x32xf32, #tpu.memory_space<vmem>>, %arg8: memref<2x32x32xf32, #tpu.memory_space<vmem>>, %arg9: memref<1x1x32xf32, #tpu.memory_space<vmem>>, %arg10: memref<2x32x64xf32, #tpu.memory_space<vmem>>, %arg11: memref<2x32x64xf32, #tpu.memory_space<vmem>>, %arg12: memref<1x1x64xf32, #tpu.memory_space<vmem>>, %arg13: memref<2x32x32xf32, #tpu.memory_space<vmem>>, %arg14: memref<2x32x32xf32, #tpu.memory_space<vmem>>, %arg15: memref<1x1x32xf32, #tpu.memory_space<vmem>>, %arg16: memref<1x1x32xf32, #tpu.memory_space<vmem>>, %arg17: memref<1x1xf32, #tpu.memory_space<vmem>>, %arg18: memref<7x2x16xf32, #tpu.memory_space<vmem>>) attributes {dimension_semantics = [], scalar_prefetch = 0 : i64, scratch_operands = 0 : i64, tpu.core_type = #tpu.core_type<tc>} {
    %c0 = arith.constant 0 : index
    %c0_0 = arith.constant 0 : index
    %c0_1 = arith.constant 0 : index
    %0 = vector.load %arg1[%c0, %c0_0, %c0_1] : memref<2x16x16xf32, #tpu.memory_space<vmem>>, vector<2x16x16xf32>
    %1 = vector.extract_strided_slice %0 {offsets = [0, 0, 0], sizes = [1, 16, 16], strides = [1, 1, 1]} : vector<2x16x16xf32> to vector<1x16x16xf32>
    %2 = vector.shape_cast %1 : vector<1x16x16xf32> to vector<16x16xf32>
    %3 = vector.shape_cast %2 : vector<16x16xf32> to vector<1x16x16xf32>
    %4 = vector.broadcast %3 : vector<1x16x16xf32> to vector<2x16x16xf32>
    %5 = vector.extract_strided_slice %0 {offsets = [1, 0, 0], sizes = [1, 16, 16], strides = [1, 1, 1]} : vector<2x16x16xf32> to vector<1x16x16xf32>
    %6 = vector.shape_cast %5 : vector<1x16x16xf32> to vector<16x16xf32>
    %7 = vector.shape_cast %6 : vector<16x16xf32> to vector<1x16x16xf32>
    %8 = vector.broadcast %7 : vector<1x16x16xf32> to vector<2x16x16xf32>
    %c0_2 = arith.constant 0 : index
    %c0_3 = arith.constant 0 : index
    %c0_4 = arith.constant 0 : index
    %9 = vector.load %arg16[%c0_2, %c0_3, %c0_4] : memref<1x1x32xf32, #tpu.memory_space<vmem>>, vector<1x1x32xf32>
    %c0_5 = arith.constant 0 : index
    %c0_6 = arith.constant 0 : index
    %10 = vector.load %arg17[%c0_5, %c0_6] : memref<1x1xf32, #tpu.memory_space<vmem>>, vector<1x1xf32>
    %c0_7 = arith.constant 0 : index
    %c0_8 = arith.constant 0 : index
    %c0_9 = arith.constant 0 : index
    %11 = vector.load %arg4[%c0_7, %c0_8, %c0_9] : memref<2x1x64xf32, #tpu.memory_space<vmem>>, vector<2x1x64xf32>
    %c0_10 = arith.constant 0 : index
    %c0_11 = arith.constant 0 : index
    %c0_12 = arith.constant 0 : index
    %12 = vector.load %arg5[%c0_10, %c0_11, %c0_12] : memref<2x32x64xf32, #tpu.memory_space<vmem>>, vector<2x32x64xf32>
    %c0_13 = arith.constant 0 : index
    %c0_14 = arith.constant 0 : index
    %c0_15 = arith.constant 0 : index
    %13 = vector.load %arg6[%c0_13, %c0_14, %c0_15] : memref<1x1x64xf32, #tpu.memory_space<vmem>>, vector<1x1x64xf32>
    %c0_16 = arith.constant 0 : index
    %c0_17 = arith.constant 0 : index
    %c0_18 = arith.constant 0 : index
    %14 = vector.load %arg7[%c0_16, %c0_17, %c0_18] : memref<2x1x32xf32, #tpu.memory_space<vmem>>, vector<2x1x32xf32>
    %c0_19 = arith.constant 0 : index
    %c0_20 = arith.constant 0 : index
    %c0_21 = arith.constant 0 : index
    %15 = vector.load %arg8[%c0_19, %c0_20, %c0_21] : memref<2x32x32xf32, #tpu.memory_space<vmem>>, vector<2x32x32xf32>
    %c0_22 = arith.constant 0 : index
    %c0_23 = arith.constant 0 : index
    %c0_24 = arith.constant 0 : index
    %16 = vector.load %arg9[%c0_22, %c0_23, %c0_24] : memref<1x1x32xf32, #tpu.memory_space<vmem>>, vector<1x1x32xf32>
    %c0_25 = arith.constant 0 : index
    %c0_26 = arith.constant 0 : index
    %c0_27 = arith.constant 0 : index
    %17 = vector.load %arg10[%c0_25, %c0_26, %c0_27] : memref<2x32x64xf32, #tpu.memory_space<vmem>>, vector<2x32x64xf32>
    %c0_28 = arith.constant 0 : index
    %c0_29 = arith.constant 0 : index
    %c0_30 = arith.constant 0 : index
    %18 = vector.load %arg11[%c0_28, %c0_29, %c0_30] : memref<2x32x64xf32, #tpu.memory_space<vmem>>, vector<2x32x64xf32>
    %c0_31 = arith.constant 0 : index
    %c0_32 = arith.constant 0 : index
    %c0_33 = arith.constant 0 : index
    %19 = vector.load %arg12[%c0_31, %c0_32, %c0_33] : memref<1x1x64xf32, #tpu.memory_space<vmem>>, vector<1x1x64xf32>
    %c0_34 = arith.constant 0 : index
    %c0_35 = arith.constant 0 : index
    %c0_36 = arith.constant 0 : index
    %20 = vector.load %arg13[%c0_34, %c0_35, %c0_36] : memref<2x32x32xf32, #tpu.memory_space<vmem>>, vector<2x32x32xf32>
    %c0_37 = arith.constant 0 : index
    %c0_38 = arith.constant 0 : index
    %c0_39 = arith.constant 0 : index
    %21 = vector.load %arg14[%c0_37, %c0_38, %c0_39] : memref<2x32x32xf32, #tpu.memory_space<vmem>>, vector<2x32x32xf32>
    %c0_40 = arith.constant 0 : index
    %c0_41 = arith.constant 0 : index
    %c0_42 = arith.constant 0 : index
    %22 = vector.load %arg15[%c0_40, %c0_41, %c0_42] : memref<1x1x32xf32, #tpu.memory_space<vmem>>, vector<1x1x32xf32>
    %c0_43 = arith.constant 0 : index
    %c0_44 = arith.constant 0 : index
    %c0_45 = arith.constant 0 : index
    %c0_46 = arith.constant 0 : index
    %23 = vector.load %arg3[%c0_43, %c0_44, %c0_45, %c0_46] : memref<2x2x16x32xf32, #tpu.memory_space<vmem>>, vector<2x2x16x32xf32>
    %24 = vector.extract_strided_slice %23 {offsets = [0, 0, 0, 0], sizes = [1, 2, 16, 32], strides = [1, 1, 1, 1]} : vector<2x2x16x32xf32> to vector<1x2x16x32xf32>
    %25 = vector.shape_cast %24 : vector<1x2x16x32xf32> to vector<2x16x32xf32>
    %26 = vector.extract_strided_slice %23 {offsets = [1, 0, 0, 0], sizes = [1, 2, 16, 32], strides = [1, 1, 1, 1]} : vector<2x2x16x32xf32> to vector<1x2x16x32xf32>
    %27 = vector.shape_cast %26 : vector<1x2x16x32xf32> to vector<2x16x32xf32>
    %cst = arith.constant 0.000000e+00 : f32
    %28 = vector.broadcast %cst : f32 to vector<2x16xf32>
    %c0_i32 = arith.constant 0 : i32
    %c7_i32 = arith.constant 7 : i32
    %29 = arith.addi %c0_i32, %c7_i32 : i32
    %c1_i32 = arith.constant 1 : i32
    %30:3 = scf.for %arg19 = %c0_i32 to %29 step %c1_i32 iter_args(%arg20 = %25, %arg21 = %27, %arg22 = %28) -> (vector<2x16x32xf32>, vector<2x16x32xf32>, vector<2x16xf32>)  : i32 {
      %31 = arith.index_cast %arg19 : i32 to index
      %c0_48 = arith.constant 0 : index
      %c0_49 = arith.constant 0 : index
      %32 = vector.load %arg2[%31, %c0_48, %c0_49] : memref<8x2x16xf32, #tpu.memory_space<vmem>>, vector<1x2x16xf32>
      %33 = vector.shape_cast %32 : vector<1x2x16xf32> to vector<2x16xf32>
      %c1_i32_50 = arith.constant 1 : i32
      %34 = arith.subi %arg19, %c1_i32_50 : i32
      %c0_i32_51 = arith.constant 0 : i32
      %35 = arith.maxsi %34, %c0_i32_51 : i32
      %36 = arith.index_cast %35 : i32 to index
      %37 = memref.load %arg0[%36] : memref<7xi32, #tpu.memory_space<smem>>
      %c0_i32_52 = arith.constant 0 : i32
      %38 = arith.cmpi eq, %arg19, %c0_i32_52 : i32
      %c0_i32_53 = arith.constant 0 : i32
      %39 = arith.cmpi sgt, %37, %c0_i32_53 : i32
      %40 = arith.ori %38, %39 : i1
      %41 = arith.select %40, %33, %arg22 : vector<2x16xf32>
      %42 = vector.shape_cast %41 : vector<2x16xf32> to vector<2x16x1xf32>
      %43 = vector.extract_strided_slice %11 {offsets = [0, 0, 0], sizes = [1, 1, 64], strides = [1, 1, 1]} : vector<2x1x64xf32> to vector<1x1x64xf32>
      %44 = vector.shape_cast %43 : vector<1x1x64xf32> to vector<1x64xf32>
      %45 = vector.shape_cast %44 : vector<1x64xf32> to vector<1x1x64xf32>
      %46 = vector.broadcast %42 : vector<2x16x1xf32> to vector<2x16x64xf32>
      %47 = vector.broadcast %45 : vector<1x1x64xf32> to vector<2x16x64xf32>
      %48 = arith.mulf %46, %47 : vector<2x16x64xf32>
      %49 = vector.extract_strided_slice %12 {offsets = [0, 0, 0], sizes = [1, 32, 64], strides = [1, 1, 1]} : vector<2x32x64xf32> to vector<1x32x64xf32>
      %50 = vector.shape_cast %49 : vector<1x32x64xf32> to vector<32x64xf32>
      "tpu.trace_start"() <{level = 10 : i32, message = "bnd,dc->bnc"}> : () -> ()
      %cst_54 = arith.constant dense<0.000000e+00> : vector<2x16x64xf32>
      %51 = tpu.matmul %arg20, %50, %cst_54 {dimension_numbers = #tpu.dot_dimension_numbers<[2], [0], [0, 1], [1], [0, 0, 0, 1, 1, 1], [], []>} : vector<2x16x32xf32>, vector<32x64xf32>, vector<2x16x64xf32> -> vector<2x16x64xf32>
      "tpu.trace_stop"() : () -> ()
      %52 = arith.addf %48, %51 : vector<2x16x64xf32>
      "tpu.trace_start"() <{level = 10 : i32, message = "bkm,bmc->bkc"}> : () -> ()
      %cst_55 = arith.constant dense<0.000000e+00> : vector<2x16x64xf32>
      %53 = tpu.matmul %4, %52, %cst_55 {dimension_numbers = #tpu.dot_dimension_numbers<[2], [1], [1], [2], [0, 0, 0, 1, 1, 2], [0], [0]>} : vector<2x16x16xf32>, vector<2x16x64xf32>, vector<2x16x64xf32> -> vector<2x16x64xf32>
      "tpu.trace_stop"() : () -> ()
      %54 = vector.extract_strided_slice %11 {offsets = [1, 0, 0], sizes = [1, 1, 64], strides = [1, 1, 1]} : vector<2x1x64xf32> to vector<1x1x64xf32>
      %55 = vector.shape_cast %54 : vector<1x1x64xf32> to vector<1x64xf32>
      %56 = vector.shape_cast %55 : vector<1x64xf32> to vector<1x1x64xf32>
      %57 = vector.broadcast %42 : vector<2x16x1xf32> to vector<2x16x64xf32>
      %58 = vector.broadcast %56 : vector<1x1x64xf32> to vector<2x16x64xf32>
      %59 = arith.mulf %57, %58 : vector<2x16x64xf32>
      %60 = vector.extract_strided_slice %12 {offsets = [1, 0, 0], sizes = [1, 32, 64], strides = [1, 1, 1]} : vector<2x32x64xf32> to vector<1x32x64xf32>
      %61 = vector.shape_cast %60 : vector<1x32x64xf32> to vector<32x64xf32>
      "tpu.trace_start"() <{level = 10 : i32, message = "bnd,dc->bnc"}> : () -> ()
      %cst_56 = arith.constant dense<0.000000e+00> : vector<2x16x64xf32>
      %62 = tpu.matmul %arg20, %61, %cst_56 {dimension_numbers = #tpu.dot_dimension_numbers<[2], [0], [0, 1], [1], [0, 0, 0, 1, 1, 1], [], []>} : vector<2x16x32xf32>, vector<32x64xf32>, vector<2x16x64xf32> -> vector<2x16x64xf32>
      "tpu.trace_stop"() : () -> ()
      %63 = arith.addf %59, %62 : vector<2x16x64xf32>
      "tpu.trace_start"() <{level = 10 : i32, message = "bkm,bmc->bkc"}> : () -> ()
      %cst_57 = arith.constant dense<0.000000e+00> : vector<2x16x64xf32>
      %64 = tpu.matmul %8, %63, %cst_57 {dimension_numbers = #tpu.dot_dimension_numbers<[2], [1], [1], [2], [0, 0, 0, 1, 1, 2], [0], [0]>} : vector<2x16x16xf32>, vector<2x16x64xf32>, vector<2x16x64xf32> -> vector<2x16x64xf32>
      "tpu.trace_stop"() : () -> ()
      %65 = arith.addf %53, %64 : vector<2x16x64xf32>
      %66 = vector.broadcast %13 : vector<1x1x64xf32> to vector<2x16x64xf32>
      %67 = arith.addf %65, %66 : vector<2x16x64xf32>
      %68 = vector.extract_strided_slice %67 {offsets = [0, 0, 0], sizes = [2, 16, 32], strides = [1, 1, 1]} : vector<2x16x64xf32> to vector<2x16x32xf32>
      %69 = arith.negf %68 : vector<2x16x32xf32>
      %70 = math.exp %69 : vector<2x16x32xf32>
      %cst_58 = arith.constant 1.000000e+00 : f32
      %71 = vector.broadcast %cst_58 : f32 to vector<2x16x32xf32>
      %72 = arith.addf %71, %70 : vector<2x16x32xf32>
      %73 = arith.divf %71, %72 : vector<2x16x32xf32>
      %74 = vector.extract_strided_slice %67 {offsets = [0, 0, 32], sizes = [2, 16, 32], strides = [1, 1, 1]} : vector<2x16x64xf32> to vector<2x16x32xf32>
      %75 = arith.negf %74 : vector<2x16x32xf32>
      %76 = math.exp %75 : vector<2x16x32xf32>
      %cst_59 = arith.constant 1.000000e+00 : f32
      %77 = vector.broadcast %cst_59 : f32 to vector<2x16x32xf32>
      %78 = arith.addf %77, %76 : vector<2x16x32xf32>
      %79 = arith.divf %77, %78 : vector<2x16x32xf32>
      %80 = arith.mulf %73, %arg20 : vector<2x16x32xf32>
      %81 = vector.extract_strided_slice %14 {offsets = [0, 0, 0], sizes = [1, 1, 32], strides = [1, 1, 1]} : vector<2x1x32xf32> to vector<1x1x32xf32>
      %82 = vector.shape_cast %81 : vector<1x1x32xf32> to vector<1x32xf32>
      %83 = vector.shape_cast %82 : vector<1x32xf32> to vector<1x1x32xf32>
      %84 = vector.broadcast %42 : vector<2x16x1xf32> to vector<2x16x32xf32>
      %85 = vector.broadcast %83 : vector<1x1x32xf32> to vector<2x16x32xf32>
      %86 = arith.mulf %84, %85 : vector<2x16x32xf32>
      %87 = vector.extract_strided_slice %15 {offsets = [0, 0, 0], sizes = [1, 32, 32], strides = [1, 1, 1]} : vector<2x32x32xf32> to vector<1x32x32xf32>
      %88 = vector.shape_cast %87 : vector<1x32x32xf32> to vector<32x32xf32>
      "tpu.trace_start"() <{level = 10 : i32, message = "bnd,dc->bnc"}> : () -> ()
      %cst_60 = arith.constant dense<0.000000e+00> : vector<2x16x32xf32>
      %89 = tpu.matmul %80, %88, %cst_60 {dimension_numbers = #tpu.dot_dimension_numbers<[2], [0], [0, 1], [1], [0, 0, 0, 1, 1, 1], [], []>} : vector<2x16x32xf32>, vector<32x32xf32>, vector<2x16x32xf32> -> vector<2x16x32xf32>
      "tpu.trace_stop"() : () -> ()
      %90 = arith.addf %86, %89 : vector<2x16x32xf32>
      "tpu.trace_start"() <{level = 10 : i32, message = "bkm,bmc->bkc"}> : () -> ()
      %cst_61 = arith.constant dense<0.000000e+00> : vector<2x16x32xf32>
      %91 = tpu.matmul %4, %90, %cst_61 {dimension_numbers = #tpu.dot_dimension_numbers<[2], [1], [1], [2], [0, 0, 0, 1, 1, 2], [0], [0]>} : vector<2x16x16xf32>, vector<2x16x32xf32>, vector<2x16x32xf32> -> vector<2x16x32xf32>
      "tpu.trace_stop"() : () -> ()
      %92 = vector.extract_strided_slice %14 {offsets = [1, 0, 0], sizes = [1, 1, 32], strides = [1, 1, 1]} : vector<2x1x32xf32> to vector<1x1x32xf32>
      %93 = vector.shape_cast %92 : vector<1x1x32xf32> to vector<1x32xf32>
      %94 = vector.shape_cast %93 : vector<1x32xf32> to vector<1x1x32xf32>
      %95 = vector.broadcast %42 : vector<2x16x1xf32> to vector<2x16x32xf32>
      %96 = vector.broadcast %94 : vector<1x1x32xf32> to vector<2x16x32xf32>
      %97 = arith.mulf %95, %96 : vector<2x16x32xf32>
      %98 = vector.extract_strided_slice %15 {offsets = [1, 0, 0], sizes = [1, 32, 32], strides = [1, 1, 1]} : vector<2x32x32xf32> to vector<1x32x32xf32>
      %99 = vector.shape_cast %98 : vector<1x32x32xf32> to vector<32x32xf32>
      "tpu.trace_start"() <{level = 10 : i32, message = "bnd,dc->bnc"}> : () -> ()
      %cst_62 = arith.constant dense<0.000000e+00> : vector<2x16x32xf32>
      %100 = tpu.matmul %80, %99, %cst_62 {dimension_numbers = #tpu.dot_dimension_numbers<[2], [0], [0, 1], [1], [0, 0, 0, 1, 1, 1], [], []>} : vector<2x16x32xf32>, vector<32x32xf32>, vector<2x16x32xf32> -> vector<2x16x32xf32>
      "tpu.trace_stop"() : () -> ()
      %101 = arith.addf %97, %100 : vector<2x16x32xf32>
      "tpu.trace_start"() <{level = 10 : i32, message = "bkm,bmc->bkc"}> : () -> ()
      %cst_63 = arith.constant dense<0.000000e+00> : vector<2x16x32xf32>
      %102 = tpu.matmul %8, %101, %cst_63 {dimension_numbers = #tpu.dot_dimension_numbers<[2], [1], [1], [2], [0, 0, 0, 1, 1, 2], [0], [0]>} : vector<2x16x16xf32>, vector<2x16x32xf32>, vector<2x16x32xf32> -> vector<2x16x32xf32>
      "tpu.trace_stop"() : () -> ()
      %103 = arith.addf %91, %102 : vector<2x16x32xf32>
      %104 = vector.broadcast %16 : vector<1x1x32xf32> to vector<2x16x32xf32>
      %105 = arith.addf %103, %104 : vector<2x16x32xf32>
      %106 = math.tanh %105 : vector<2x16x32xf32>
      %107 = arith.mulf %79, %arg20 : vector<2x16x32xf32>
      %cst_64 = arith.constant 1.000000e+00 : f32
      %108 = vector.broadcast %cst_64 : f32 to vector<2x16x32xf32>
      %109 = arith.subf %108, %79 : vector<2x16x32xf32>
      %110 = arith.mulf %109, %106 : vector<2x16x32xf32>
      %111 = arith.addf %107, %110 : vector<2x16x32xf32>
      %112 = vector.extract_strided_slice %17 {offsets = [0, 0, 0], sizes = [1, 32, 64], strides = [1, 1, 1]} : vector<2x32x64xf32> to vector<1x32x64xf32>
      %113 = vector.shape_cast %112 : vector<1x32x64xf32> to vector<32x64xf32>
      "tpu.trace_start"() <{level = 10 : i32, message = "bnd,dc->bnc"}> : () -> ()
      %cst_65 = arith.constant dense<0.000000e+00> : vector<2x16x64xf32>
      %114 = tpu.matmul %111, %113, %cst_65 {dimension_numbers = #tpu.dot_dimension_numbers<[2], [0], [0, 1], [1], [0, 0, 0, 1, 1, 1], [], []>} : vector<2x16x32xf32>, vector<32x64xf32>, vector<2x16x64xf32> -> vector<2x16x64xf32>
      "tpu.trace_stop"() : () -> ()
      %115 = vector.extract_strided_slice %18 {offsets = [0, 0, 0], sizes = [1, 32, 64], strides = [1, 1, 1]} : vector<2x32x64xf32> to vector<1x32x64xf32>
      %116 = vector.shape_cast %115 : vector<1x32x64xf32> to vector<32x64xf32>
      "tpu.trace_start"() <{level = 10 : i32, message = "bnd,dc->bnc"}> : () -> ()
      %cst_66 = arith.constant dense<0.000000e+00> : vector<2x16x64xf32>
      %117 = tpu.matmul %arg21, %116, %cst_66 {dimension_numbers = #tpu.dot_dimension_numbers<[2], [0], [0, 1], [1], [0, 0, 0, 1, 1, 1], [], []>} : vector<2x16x32xf32>, vector<32x64xf32>, vector<2x16x64xf32> -> vector<2x16x64xf32>
      "tpu.trace_stop"() : () -> ()
      %118 = arith.addf %114, %117 : vector<2x16x64xf32>
      "tpu.trace_start"() <{level = 10 : i32, message = "bkm,bmc->bkc"}> : () -> ()
      %cst_67 = arith.constant dense<0.000000e+00> : vector<2x16x64xf32>
      %119 = tpu.matmul %4, %118, %cst_67 {dimension_numbers = #tpu.dot_dimension_numbers<[2], [1], [1], [2], [0, 0, 0, 1, 1, 2], [0], [0]>} : vector<2x16x16xf32>, vector<2x16x64xf32>, vector<2x16x64xf32> -> vector<2x16x64xf32>
      "tpu.trace_stop"() : () -> ()
      %120 = vector.extract_strided_slice %17 {offsets = [1, 0, 0], sizes = [1, 32, 64], strides = [1, 1, 1]} : vector<2x32x64xf32> to vector<1x32x64xf32>
      %121 = vector.shape_cast %120 : vector<1x32x64xf32> to vector<32x64xf32>
      "tpu.trace_start"() <{level = 10 : i32, message = "bnd,dc->bnc"}> : () -> ()
      %cst_68 = arith.constant dense<0.000000e+00> : vector<2x16x64xf32>
      %122 = tpu.matmul %111, %121, %cst_68 {dimension_numbers = #tpu.dot_dimension_numbers<[2], [0], [0, 1], [1], [0, 0, 0, 1, 1, 1], [], []>} : vector<2x16x32xf32>, vector<32x64xf32>, vector<2x16x64xf32> -> vector<2x16x64xf32>
      "tpu.trace_stop"() : () -> ()
      %123 = vector.extract_strided_slice %18 {offsets = [1, 0, 0], sizes = [1, 32, 64], strides = [1, 1, 1]} : vector<2x32x64xf32> to vector<1x32x64xf32>
      %124 = vector.shape_cast %123 : vector<1x32x64xf32> to vector<32x64xf32>
      "tpu.trace_start"() <{level = 10 : i32, message = "bnd,dc->bnc"}> : () -> ()
      %cst_69 = arith.constant dense<0.000000e+00> : vector<2x16x64xf32>
      %125 = tpu.matmul %arg21, %124, %cst_69 {dimension_numbers = #tpu.dot_dimension_numbers<[2], [0], [0, 1], [1], [0, 0, 0, 1, 1, 1], [], []>} : vector<2x16x32xf32>, vector<32x64xf32>, vector<2x16x64xf32> -> vector<2x16x64xf32>
      "tpu.trace_stop"() : () -> ()
      %126 = arith.addf %122, %125 : vector<2x16x64xf32>
      "tpu.trace_start"() <{level = 10 : i32, message = "bkm,bmc->bkc"}> : () -> ()
      %cst_70 = arith.constant dense<0.000000e+00> : vector<2x16x64xf32>
      %127 = tpu.matmul %8, %126, %cst_70 {dimension_numbers = #tpu.dot_dimension_numbers<[2], [1], [1], [2], [0, 0, 0, 1, 1, 2], [0], [0]>} : vector<2x16x16xf32>, vector<2x16x64xf32>, vector<2x16x64xf32> -> vector<2x16x64xf32>
      "tpu.trace_stop"() : () -> ()
      %128 = arith.addf %119, %127 : vector<2x16x64xf32>
      %129 = vector.broadcast %19 : vector<1x1x64xf32> to vector<2x16x64xf32>
      %130 = arith.addf %128, %129 : vector<2x16x64xf32>
      %131 = vector.extract_strided_slice %130 {offsets = [0, 0, 0], sizes = [2, 16, 32], strides = [1, 1, 1]} : vector<2x16x64xf32> to vector<2x16x32xf32>
      %132 = arith.negf %131 : vector<2x16x32xf32>
      %133 = math.exp %132 : vector<2x16x32xf32>
      %cst_71 = arith.constant 1.000000e+00 : f32
      %134 = vector.broadcast %cst_71 : f32 to vector<2x16x32xf32>
      %135 = arith.addf %134, %133 : vector<2x16x32xf32>
      %136 = arith.divf %134, %135 : vector<2x16x32xf32>
      %137 = vector.extract_strided_slice %130 {offsets = [0, 0, 32], sizes = [2, 16, 32], strides = [1, 1, 1]} : vector<2x16x64xf32> to vector<2x16x32xf32>
      %138 = arith.negf %137 : vector<2x16x32xf32>
      %139 = math.exp %138 : vector<2x16x32xf32>
      %cst_72 = arith.constant 1.000000e+00 : f32
      %140 = vector.broadcast %cst_72 : f32 to vector<2x16x32xf32>
      %141 = arith.addf %140, %139 : vector<2x16x32xf32>
      %142 = arith.divf %140, %141 : vector<2x16x32xf32>
      %143 = arith.mulf %136, %arg21 : vector<2x16x32xf32>
      %144 = vector.extract_strided_slice %20 {offsets = [0, 0, 0], sizes = [1, 32, 32], strides = [1, 1, 1]} : vector<2x32x32xf32> to vector<1x32x32xf32>
      %145 = vector.shape_cast %144 : vector<1x32x32xf32> to vector<32x32xf32>
      "tpu.trace_start"() <{level = 10 : i32, message = "bnd,dc->bnc"}> : () -> ()
      %cst_73 = arith.constant dense<0.000000e+00> : vector<2x16x32xf32>
      %146 = tpu.matmul %111, %145, %cst_73 {dimension_numbers = #tpu.dot_dimension_numbers<[2], [0], [0, 1], [1], [0, 0, 0, 1, 1, 1], [], []>} : vector<2x16x32xf32>, vector<32x32xf32>, vector<2x16x32xf32> -> vector<2x16x32xf32>
      "tpu.trace_stop"() : () -> ()
      %147 = vector.extract_strided_slice %21 {offsets = [0, 0, 0], sizes = [1, 32, 32], strides = [1, 1, 1]} : vector<2x32x32xf32> to vector<1x32x32xf32>
      %148 = vector.shape_cast %147 : vector<1x32x32xf32> to vector<32x32xf32>
      "tpu.trace_start"() <{level = 10 : i32, message = "bnd,dc->bnc"}> : () -> ()
      %cst_74 = arith.constant dense<0.000000e+00> : vector<2x16x32xf32>
      %149 = tpu.matmul %143, %148, %cst_74 {dimension_numbers = #tpu.dot_dimension_numbers<[2], [0], [0, 1], [1], [0, 0, 0, 1, 1, 1], [], []>} : vector<2x16x32xf32>, vector<32x32xf32>, vector<2x16x32xf32> -> vector<2x16x32xf32>
      "tpu.trace_stop"() : () -> ()
      %150 = arith.addf %146, %149 : vector<2x16x32xf32>
      "tpu.trace_start"() <{level = 10 : i32, message = "bkm,bmc->bkc"}> : () -> ()
      %cst_75 = arith.constant dense<0.000000e+00> : vector<2x16x32xf32>
      %151 = tpu.matmul %4, %150, %cst_75 {dimension_numbers = #tpu.dot_dimension_numbers<[2], [1], [1], [2], [0, 0, 0, 1, 1, 2], [0], [0]>} : vector<2x16x16xf32>, vector<2x16x32xf32>, vector<2x16x32xf32> -> vector<2x16x32xf32>
      "tpu.trace_stop"() : () -> ()
      %152 = vector.extract_strided_slice %20 {offsets = [1, 0, 0], sizes = [1, 32, 32], strides = [1, 1, 1]} : vector<2x32x32xf32> to vector<1x32x32xf32>
      %153 = vector.shape_cast %152 : vector<1x32x32xf32> to vector<32x32xf32>
      "tpu.trace_start"() <{level = 10 : i32, message = "bnd,dc->bnc"}> : () -> ()
      %cst_76 = arith.constant dense<0.000000e+00> : vector<2x16x32xf32>
      %154 = tpu.matmul %111, %153, %cst_76 {dimension_numbers = #tpu.dot_dimension_numbers<[2], [0], [0, 1], [1], [0, 0, 0, 1, 1, 1], [], []>} : vector<2x16x32xf32>, vector<32x32xf32>, vector<2x16x32xf32> -> vector<2x16x32xf32>
      "tpu.trace_stop"() : () -> ()
      %155 = vector.extract_strided_slice %21 {offsets = [1, 0, 0], sizes = [1, 32, 32], strides = [1, 1, 1]} : vector<2x32x32xf32> to vector<1x32x32xf32>
      %156 = vector.shape_cast %155 : vector<1x32x32xf32> to vector<32x32xf32>
      "tpu.trace_start"() <{level = 10 : i32, message = "bnd,dc->bnc"}> : () -> ()
      %cst_77 = arith.constant dense<0.000000e+00> : vector<2x16x32xf32>
      %157 = tpu.matmul %143, %156, %cst_77 {dimension_numbers = #tpu.dot_dimension_numbers<[2], [0], [0, 1], [1], [0, 0, 0, 1, 1, 1], [], []>} : vector<2x16x32xf32>, vector<32x32xf32>, vector<2x16x32xf32> -> vector<2x16x32xf32>
      "tpu.trace_stop"() : () -> ()
      %158 = arith.addf %154, %157 : vector<2x16x32xf32>
      "tpu.trace_start"() <{level = 10 : i32, message = "bkm,bmc->bkc"}> : () -> ()
      %cst_78 = arith.constant dense<0.000000e+00> : vector<2x16x32xf32>
      %159 = tpu.matmul %8, %158, %cst_78 {dimension_numbers = #tpu.dot_dimension_numbers<[2], [1], [1], [2], [0, 0, 0, 1, 1, 2], [0], [0]>} : vector<2x16x16xf32>, vector<2x16x32xf32>, vector<2x16x32xf32> -> vector<2x16x32xf32>
      "tpu.trace_stop"() : () -> ()
      %160 = arith.addf %151, %159 : vector<2x16x32xf32>
      %161 = vector.broadcast %22 : vector<1x1x32xf32> to vector<2x16x32xf32>
      %162 = arith.addf %160, %161 : vector<2x16x32xf32>
      %163 = math.tanh %162 : vector<2x16x32xf32>
      %164 = arith.mulf %142, %arg21 : vector<2x16x32xf32>
      %cst_79 = arith.constant 1.000000e+00 : f32
      %165 = vector.broadcast %cst_79 : f32 to vector<2x16x32xf32>
      %166 = arith.subf %165, %142 : vector<2x16x32xf32>
      %167 = arith.mulf %166, %163 : vector<2x16x32xf32>
      %168 = arith.addf %164, %167 : vector<2x16x32xf32>
      %169 = vector.broadcast %9 : vector<1x1x32xf32> to vector<2x16x32xf32>
      %170 = arith.mulf %168, %169 : vector<2x16x32xf32>
      %cst_80 = arith.constant dense<0.000000e+00> : vector<2x16xf32>
      %171 = vector.multi_reduction <add>, %170, %cst_80 [2] : vector<2x16x32xf32> to vector<2x16xf32>
      %172 = vector.broadcast %10 : vector<1x1xf32> to vector<2x16xf32>
      %173 = arith.addf %171, %172 : vector<2x16xf32>
      %174 = arith.index_cast %arg19 : i32 to index
      %c0_81 = arith.constant 0 : index
      %c0_82 = arith.constant 0 : index
      %175 = vector.load %arg18[%174, %c0_81, %c0_82] : memref<7x2x16xf32, #tpu.memory_space<vmem>>, vector<1x2x16xf32>
      %176 = vector.shape_cast %175 : vector<1x2x16xf32> to vector<2x16xf32>
      %177 = vector.shape_cast %173 : vector<2x16xf32> to vector<1x2x16xf32>
      tpu.vector_store %arg18[%174, %c0_81, %c0_82], %177 {strides = array<i32>} : memref<7x2x16xf32, #tpu.memory_space<vmem>>, vector<1x2x16xf32>,
      scf.yield %111, %168, %173 : vector<2x16x32xf32>, vector<2x16x32xf32>, vector<2x16xf32>
    }
    %c7_i32_47 = arith.constant 7 : i32
    return
  }
}

</mosaic_0001>

<bundles_post_ra>
// kernel: tpu_custom_call.1
= control target key start
LH: loop header
LB: loop body
LE: loop exit
PB: predicated region body
PF: predicated region fallthrough
CT: control target
= control target key end

     0   :  { %s5206_s0 = inlined_call_operand.vmem [shape: s32[7], index: 0, kind: input, shape index: {}]   ;;  %s5207_s1 = inlined_call_operand.hbm [shape: f32[2,16,16], index: 1, kind: input, shape index: {}]   ;;  %s5208_s2 = inlined_call_operand.hbm [shape: f32[8,2,16], index: 2, kind: input, shape index: {}]   ;;  %s5209_s3 = inlined_call_operand.hbm [shape: f32[2,2,16,32], index: 3, kind: input, shape index: {}]   ;;  %s5210_s4 = inlined_call_operand.vmem [shape: f32[2,1,64], index: 4, kind: input, shape index: {}]   ;;  %s5211_s5 = inlined_call_operand.hbm [shape: f32[2,32,64], index: 5, kind: input, shape index: {}]   ;;  %s5212_s6 = inlined_call_operand.vmem [shape: f32[1,1,64], index: 6, kind: input, shape index: {}]   ;;  %s5213_s7 = inlined_call_operand.vmem [shape: f32[2,1,32], index: 7, kind: input, shape index: {}]   ;;  %s5214_s8 = inlined_call_operand.hbm [shape: f32[2,32,32], index: 8, kind: input, shape index: {}]   ;;  %s5215_s9 = inlined_call_operand.vmem [shape: f32[1,1,32], index: 9, kind: input, shape index: {}]   ;;  %s5216_s10 = inlined_call_operand.hbm [shape: f32[2,32,64], index: 10, kind: input, shape index: {}]   ;;  %s5217_s11 = inlined_call_operand.hbm [shape: f32[2,32,64], index: 11, kind: input, shape index: {}]   ;;  %s5218_s12 = inlined_call_operand.vmem [shape: f32[1,1,64], index: 12, kind: input, shape index: {}]   ;;  %s5219_s13 = inlined_call_operand.hbm [shape: f32[2,32,32], index: 13, kind: input, shape index: {}]   ;;  %s5220_s14 = inlined_call_operand.hbm [shape: f32[2,32,32], index: 14, kind: input, shape index: {}]   ;;  %s5221_s15 = inlined_call_operand.vmem [shape: f32[1,1,32], index: 15, kind: input, shape index: {}]   ;;  %s5222_s16 = inlined_call_operand.vmem [shape: f32[1,1,32], index: 16, kind: input, shape index: {}]   ;;  %s5223_s17 = inlined_call_operand.<no memory space> [shape: f32[1,1], index: 17, kind: input, shape index: {}]   ;;  %s5224_s18 = inlined_call_operand.hbm [shape: f32[7,2,16], index: 18, kind: output, shape index: {}]  }
   0x1   :  { %5239 = sst [smem:[#allocation63_spill]] %s5206_s0  ;;  %v23_v0 = vstv %s5223_s17 }
   0x2   :  { %5240 = sst [smem:[#allocation64_spill]] %s5207_s1  ;;  %24 = vst [vmem:[#allocation2] sm:$0x1] %v23_v0 }
   0x3   :  { %5241 = sst [smem:[#allocation65_spill]] %s5208_s2 }
   0x4   :  { %5242 = sst [smem:[#allocation66_spill]] %s5224_s18 }
   0x5   :  { %25 = vsyncpa [#allocation6], 0 }
   0x6   :  { %26 = vsyncpa [#allocation4], 0 }
   0x7   :  { %27 = vsyncpa [#allocation9], 0 }
   0x8   :  { %28 = vsyncpa [#allocation12], 0 }
   0x9   :  { %29 = vsyncpa [#allocation15], 0 }
   0xa   :  { %30 = vsyncpa [#allocation18], 0 }
   0xb   :  { %31 = vsyncpa [#allocation5], 0  ;;  %s4320_s29 = smov [#allocation8]   ;;  %s5243_s1 = sld [smem:[#allocation65_spill]] }
   0xc   :  { %s59_s30 = sshll.u32 %s4320_s29, 4  ;;  %s60_s30 = int_to_ptr.vmem [resolvable:$true] %s59_s30 }
  0x11   :  { %s3970_s20 = scalar_lea.hbm %s5243_s1, 256 }
  0x12   :  { %p3971_p0 = scmp.ne.s32.totalorder %s5243_s1, %s3970_s20  ;;  %p3974_p1 = scmp.lt.u32.totalorder %s3970_s20, %s5243_s1 }
  0x14   :  { %p3976_p2 = pnand %p3974_p1, %p3971_p0 }
  0x16   :  { %3979 = shalt.err (!%p3976_p2)
}
  0x17   :  { %s3980_s23 = scalar_lea.vmem %s60_s30, 256  ;;  %p3985_p4 = scmp.lt.s32.totalorder %s60_s30, %s60_s30 }
  0x18   :  { %p3981_p3 = scmp.ne.s32.totalorder %s60_s30, %s3980_s23  ;;  %p3986_p5 = scmp.lt.s32.totalorder %s3980_s23, %s3980_s23 }
  0x1a   :  { %p3987_p6 = por %p3986_p5, %p3985_p4 }
  0x1c   :  { %p3988_p7 = pnand %p3987_p6, %p3981_p3 }
  0x1e   :  { %3991 = shalt.err (!%p3988_p7)
}
  0x1f   :  { %s5228_s24 = smov 32   ;;  %s5229_s25 = smov 2  }
  0x20   :  { %65 = dma.hbm_to_vmem [thread:$0]  %s5243_s1, 256, %s60_s30, [#allocation9], %s5228_s24, %s5228_s24, %s5229_s25  }
  0x21   :  { %s4323_s28 = smov [#allocation11]   ;;  %s4324_s0 = smov [#allocation14]  }
  0x22   :  { %s85_s29 = sshll.u32 %s4323_s28, 4  ;;  %s115_s19 = sshll.u32 %s4324_s0, 4  ;;  %s86_s29 = int_to_ptr.vmem [resolvable:$true] %s85_s29  ;;  %s116_s19 = int_to_ptr.vmem [resolvable:$true] %s115_s19 }
  0x23   :  { %s3992_s22 = scalar_lea.hbm %s5211_s5, 1024 }
  0x24   :  { %p3993_p8 = scmp.ne.s32.totalorder %s5211_s5, %s3992_s22  ;;  %p3996_p9 = scmp.lt.u32.totalorder %s3992_s22, %s5211_s5 }
  0x26   :  { %p3998_p10 = pnand %p3996_p9, %p3993_p8 }
  0x28   :  { %4001 = shalt.err (!%p3998_p10)
}
  0x29   :  { %s4002_s30 = scalar_lea.vmem %s86_s29, 1024  ;;  %p4007_p12 = scmp.lt.s32.totalorder %s86_s29, %s86_s29 }
  0x2a   :  { %p4003_p11 = scmp.ne.s32.totalorder %s86_s29, %s4002_s30  ;;  %p4008_p13 = scmp.lt.s32.totalorder %s4002_s30, %s4002_s30 }
  0x2c   :  { %p4009_p0 = por %p4008_p13, %p4007_p12 }
  0x2e   :  { %p4010_p1 = pnand %p4009_p0, %p4003_p11 }
  0x30   :  { %4013 = shalt.err (!%p4010_p1)
}
  0x31   :  { %s4325_s1 = smov 128   ;;  %s4326_s26 = smov 8  }
  0x32   :  { %91 = dma.hbm_to_vmem [thread:$0]  %s5211_s5, 1024, %s86_s29, [#allocation12], %s4325_s1, %s4325_s1, %s4326_s26  }
  0x33   :  { %s4014_s20 = scalar_lea.hbm %s5216_s10, 1024 }
  0x34   :  { %p4015_p2 = scmp.ne.s32.totalorder %s5216_s10, %s4014_s20  ;;  %p4018_p3 = scmp.lt.u32.totalorder %s4014_s20, %s5216_s10 }
  0x36   :  { %p4020_p4 = pnand %p4018_p3, %p4015_p2 }
  0x38   :  { %4023 = shalt.err (!%p4020_p4)
}
  0x39   :  { %s4024_s23 = scalar_lea.vmem %s116_s19, 1024  ;;  %p4029_p6 = scmp.lt.s32.totalorder %s116_s19, %s116_s19 }
  0x3a   :  { %p4025_p5 = scmp.ne.s32.totalorder %s116_s19, %s4024_s23  ;;  %p4030_p7 = scmp.lt.s32.totalorder %s4024_s23, %s4024_s23 }
  0x3c   :  { %p4031_p8 = por %p4030_p7, %p4029_p6 }
  0x3e   :  { %p4032_p9 = pnand %p4031_p8, %p4025_p5 }
  0x40   :  { %4035 = shalt.err (!%p4032_p9)
}
  0x41   :  { %121 = dma.hbm_to_vmem [thread:$0]  %s5216_s10, 1024, %s116_s19, [#allocation15], %s4325_s1, %s4325_s1, %s4326_s26  }
  0x42   :  { %s4327_s30 = smov [#allocation17]   ;;  %s5244_s0 = sld [smem:[#allocation63_spill]] }
  0x43   :  { %s141_s27 = sshll.u32 %s4327_s30, 4  ;;  %s4036_s17 = scalar_lea.hbm %s5219_s13, 1024  ;;  %s142_s27 = int_to_ptr.vmem [resolvable:$true] %s141_s27 }
  0x44   :  { %p4037_p10 = scmp.ne.s32.totalorder %s5219_s13, %s4036_s17  ;;  %p4040_p11 = scmp.lt.u32.totalorder %s4036_s17, %s5219_s13 }
  0x46   :  { %p4042_p12 = pnand %p4040_p11, %p4037_p10 }
  0x48   :  { %s38_s20 = sshll.u32 %s5244_s0, 4  ;;  %s39_s20 = int_to_ptr.vmem [resolvable:$true] %s38_s20 }
  0x49   :  { %4045 = shalt.err (!%p4042_p12)
}
  0x4a   :  { %s4046_s10 = scalar_lea.vmem %s142_s27, 1024  ;;  %p4051_p0 = scmp.lt.s32.totalorder %s142_s27, %s142_s27 }
  0x4b   :  { %p4047_p13 = scmp.ne.s32.totalorder %s142_s27, %s4046_s10  ;;  %p4052_p1 = scmp.lt.s32.totalorder %s4046_s10, %s4046_s10 }
  0x4d   :  { %p4053_p2 = por %p4052_p1, %p4051_p0 }
  0x4f   :  { %p4054_p3 = pnand %p4053_p2, %p4047_p13 }
  0x51   :  { %4057 = shalt.err (!%p4054_p3)
}
  0x52   :  { %147 = dma.hbm_to_vmem [thread:$0]  %s5219_s13, 1024, %s142_s27, [#allocation18], %s4325_s1, %s4325_s1, %s4326_s26  }
  0x53   :  { %s4058_s29 = scalar_lea.vmem %s39_s20, 16  ;;  %p4063_p5 = scmp.lt.s32.totalorder %s39_s20, %s39_s20 }
  0x54   :  { %p4059_p4 = scmp.ne.s32.totalorder %s39_s20, %s4058_s29  ;;  %p4064_p6 = scmp.lt.s32.totalorder %s4058_s29, %s4058_s29 }
  0x56   :  { %p4065_p7 = por %p4064_p6, %p4063_p5 }
  0x58   :  { %p4066_p8 = pnand %p4065_p7, %p4059_p4 }
  0x5a   :  { %4069 = shalt.err (!%p4066_p8)
}
  0x5b   :  { %s4328_s24 = smov [#allocation3]   ;;  %s4329_s25 = smov [#allocation7]  }
  0x5c   :  { %41 = dma.vmem_to_smem %s39_s20, 16, %s4328_s24, [#allocation6]  }
  0x5d   :  { %s47_s30 = sshll.u32 %s4329_s25, 4  ;;  %s4330_s28 = smov [#allocation10]   ;;  %s48_s30 = int_to_ptr.vmem [resolvable:$true] %s47_s30 }
  0x5e   :  { %s71_s18 = sshll.u32 %s4330_s28, 4  ;;  %s5245_s22 = sld [smem:[#allocation64_spill]]  ;;  %s72_s18 = int_to_ptr.vmem [resolvable:$true] %s71_s18 }
  0x64   :  { %s4070_s17 = scalar_lea.hbm %s5245_s22, 512 }
  0x65   :  { %p4071_p9 = scmp.ne.s32.totalorder %s5245_s22, %s4070_s17  ;;  %p4074_p10 = scmp.lt.u32.totalorder %s4070_s17, %s5245_s22 }
  0x67   :  { %p4076_p11 = pnand %p4074_p10, %p4071_p9 }
  0x69   :  { %4079 = shalt.err (!%p4076_p11)
}
  0x6a   :  { %s4080_s20 = scalar_lea.vmem %s48_s30, 512  ;;  %p4085_p13 = scmp.lt.s32.totalorder %s48_s30, %s48_s30 }
  0x6b   :  { %p4081_p12 = scmp.ne.s32.totalorder %s48_s30, %s4080_s20  ;;  %p4086_p0 = scmp.lt.s32.totalorder %s4080_s20, %s4080_s20 }
  0x6d   :  { %p4087_p1 = por %p4086_p0, %p4085_p13 }
  0x6f   :  { %p4088_p2 = pnand %p4087_p1, %p4081_p12 }
  0x71   :  { %4091 = shalt.err (!%p4088_p2)
}
  0x72   :  { %53 = dma.hbm_to_vmem [thread:$0]  %s5245_s22, 512, %s48_s30, [#allocation4], %s4325_s1, %s4325_s1, %s4326_s26  }
  0x73   :  { %s4092_s24 = scalar_lea.hbm %s5209_s3, 1024 }
  0x74   :  { %p4093_p3 = scmp.ne.s32.totalorder %s5209_s3, %s4092_s24  ;;  %p4096_p4 = scmp.lt.u32.totalorder %s4092_s24, %s5209_s3 }
  0x76   :  { %p4098_p5 = pnand %p4096_p4, %p4093_p3 }
  0x78   :  { %4101 = shalt.err (!%p4098_p5)
}
  0x79   :  { %s4102_s17 = scalar_lea.vmem %s72_s18, 1024  ;;  %p4107_p7 = scmp.lt.s32.totalorder %s72_s18, %s72_s18 }
  0x7a   :  { %p4103_p6 = scmp.ne.s32.totalorder %s72_s18, %s4102_s17  ;;  %p4108_p8 = scmp.lt.s32.totalorder %s4102_s17, %s4102_s17 }
  0x7c   :  { %p4109_p9 = por %p4108_p8, %p4107_p7 }
  0x7e   :  { %p4110_p10 = pnand %p4109_p9, %p4103_p6 }
  0x80   :  { %4113 = shalt.err (!%p4110_p10)
}
  0x81   :  { %77 = dma.hbm_to_vmem [thread:$0]  %s5209_s3, 1024, %s72_s18, [#allocation9], %s4325_s1, %s4325_s1, %s4326_s26  }
  0x82   :  { %s4331_s2 = smov [#allocation13]   ;;  %s4332_s27 = smov [#allocation16]  }
  0x83   :  { %s101_s13 = sshll.u32 %s4331_s2, 4  ;;  %s127_s23 = sshll.u32 %s4332_s27, 4  ;;  %s102_s13 = int_to_ptr.vmem [resolvable:$true] %s101_s13  ;;  %s128_s23 = int_to_ptr.vmem [resolvable:$true] %s127_s23 }
  0x84   :  { %s4114_s19 = scalar_lea.hbm %s5214_s8, 1024 }
  0x85   :  { %p4115_p11 = scmp.ne.s32.totalorder %s5214_s8, %s4114_s19  ;;  %p4118_p12 = scmp.lt.u32.totalorder %s4114_s19, %s5214_s8 }
  0x87   :  { %p4120_p13 = pnand %p4118_p12, %p4115_p11 }
  0x89   :  { %4123 = shalt.err (!%p4120_p13)
}
  0x8a   :  { %s4124_s3 = scalar_lea.vmem %s102_s13, 1024  ;;  %p4129_p1 = scmp.lt.s32.totalorder %s102_s13, %s102_s13 }
  0x8b   :  { %p4125_p0 = scmp.ne.s32.totalorder %s102_s13, %s4124_s3  ;;  %p4130_p2 = scmp.lt.s32.totalorder %s4124_s3, %s4124_s3 }
  0x8d   :  { %p4131_p3 = por %p4130_p2, %p4129_p1 }
  0x8f   :  { %p4132_p4 = pnand %p4131_p3, %p4125_p0 }
  0x91   :  { %4135 = shalt.err (!%p4132_p4)
}
  0x92   :  { %107 = dma.hbm_to_vmem [thread:$0]  %s5214_s8, 1024, %s102_s13, [#allocation12], %s4325_s1, %s4325_s1, %s4326_s26  }
  0x93   :  { %s4136_s17 = scalar_lea.hbm %s5217_s11, 1024 }
  0x94   :  { %p4137_p5 = scmp.ne.s32.totalorder %s5217_s11, %s4136_s17  ;;  %p4140_p6 = scmp.lt.u32.totalorder %s4136_s17, %s5217_s11 }
  0x96   :  { %p4142_p7 = pnand %p4140_p6, %p4137_p5 }
  0x98   :  { %4145 = shalt.err (!%p4142_p7)
}
  0x99   :  { %s4146_s20 = scalar_lea.vmem %s128_s23, 1024  ;;  %p4151_p9 = scmp.lt.s32.totalorder %s128_s23, %s128_s23 }
  0x9a   :  { %p4147_p8 = scmp.ne.s32.totalorder %s128_s23, %s4146_s20  ;;  %p4152_p10 = scmp.lt.s32.totalorder %s4146_s20, %s4146_s20 }
  0x9c   :  { %p4153_p11 = por %p4152_p10, %p4151_p9 }
  0x9e   :  { %p4154_p12 = pnand %p4153_p11, %p4147_p8 }
  0xa0   :  { %4157 = shalt.err (!%p4154_p12)
}
  0xa1   :  { %133 = dma.hbm_to_vmem [thread:$0]  %s5217_s11, 1024, %s128_s23, [#allocation15], %s4325_s1, %s4325_s1, %s4326_s26  }
  0xa2   :  { %s4333_s10 = smov [#allocation19]   ;;  %s4158_s24 = scalar_lea.hbm %s5220_s14, 1024 }
  0xa3   :  { %s153_s19 = sshll.u32 %s4333_s10, 4  ;;  %p4159_p13 = scmp.ne.s32.totalorder %s5220_s14, %s4158_s24  ;;  %s154_s19 = int_to_ptr.vmem [resolvable:$true] %s153_s19 }
  0xa4   :  { %p4162_p0 = scmp.lt.u32.totalorder %s4158_s24, %s5220_s14 }
  0xa6   :  { %p4164_p1 = pnand %p4162_p0, %p4159_p13 }
  0xa8   :  { %4167 = shalt.err (!%p4164_p1)
}
  0xa9   :  { %s4168_s0 = scalar_lea.vmem %s154_s19, 1024  ;;  %p4173_p3 = scmp.lt.s32.totalorder %s154_s19, %s154_s19 }
  0xaa   :  { %p4169_p2 = scmp.ne.s32.totalorder %s154_s19, %s4168_s0  ;;  %p4174_p4 = scmp.lt.s32.totalorder %s4168_s0, %s4168_s0 }
  0xac   :  { %p4175_p5 = por %p4174_p4, %p4173_p3 }
  0xae   :  { %p4176_p6 = pnand %p4175_p5, %p4169_p2 }
  0xb0   :  { %4179 = shalt.err (!%p4176_p6)
}
  0xb1   :  { %159 = dma.hbm_to_vmem [thread:$0]  %s5220_s14, 1024, %s154_s19, [#allocation18], %s4325_s1, %s4325_s1, %s4326_s26  }
  0xb2   :  { %4254 = dma.done.wait [#allocation6], 16  }
  0xb3   :  { %4255 = vsyncadd [#allocation6], 4294967280 }
  0xb4   :  { %4256 = dma.done.wait [#allocation4], 512  }
  0xb5   :  { %4257 = vsyncadd [#allocation4], 4294966784 }
  0xb6   :  { %4258 = dma.done.wait [#allocation9], 1280  }
  0xb7   :  { %4259 = vsyncadd [#allocation9], 4294966016 }
  0xb8   :  { %4260 = dma.done.wait [#allocation12], 2048  }
  0xb9   :  { %4261 = vsyncadd [#allocation12], 4294965248 }
  0xba   :  { %4262 = dma.done.wait [#allocation15], 2048  }
  0xbb   :  { %4263 = vsyncadd [#allocation15], 4294965248 }
  0xbc   :  { %4264 = dma.done.wait [#allocation18], 2048  }
  0xbd   :  { %4265 = vsyncadd [#allocation18], 4294965248 }
  0xbe   :  { %196 = sfence }
  0xbf   :  { %v4574_v1 = vld [vmem:[#allocation7] sm:$0xff]  ;;  %v4576_v2 = vld [vmem:[#allocation7 + $0x8] sm:$0xff]  ;;  %v4578_v3 = vld [vmem:[#allocation7 + $0x10] sm:$0xff] }
  0xc0   :  { %5246 = vst [vmem:[#allocation28_spill] sm:$0xff] %v4574_v1  ;;  %v4580_v4 = vld [vmem:[#allocation7 + $0x18] sm:$0xff]  ;;  %v4597_v8 = vld [vmem:[%s5210_s4 + $0x1] ss:$0 sm:$0xff]  ;;  %v4599_v9 = vld [vmem:[#allocation11] sm:$0xff] }
  0xc1   :  { %v4585_v5 = vld [vmem:[%s5222_s16] ss:$0 sm:$0xff]  ;;  %5249 = vst [vmem:[#allocation31_spill] sm:$0xff] %v4599_v9  ;;  %v4603_v11 = vld [vmem:[#allocation11 + $0x10] sm:$0xff]  ;;  %v4605_v12 = vld [vmem:[#allocation11 + $0x18] sm:$0xff] }
  0xc2   :  { %5247 = vst [vmem:[#allocation29_spill] sm:$0xff] %v4585_v5  ;;  %v4587_v6 = vld [vmem:[#allocation2] ss:$0 sm:$0xff]  ;;  %5251 = vst [vmem:[#allocation33_spill] sm:$0xff] %v4603_v11  ;;  %v4607_v13 = vld [vmem:[#allocation11 + $0x20] sm:$0xff] }
  0xc3   :  { %5248 = vst [vmem:[#allocation30_spill] sm:$0xff] %v4587_v6  ;;  %v4592_v7 = vld [vmem:[%s5210_s4] ss:$0 sm:$0xff]  ;;  %5252 = vst [vmem:[#allocation34_spill] sm:$0xff] %v4605_v12  ;;  %v4611_v15 = vld [vmem:[#allocation11 + $0x30] sm:$0xff] }
  0xc4   :  { %v4601_v10 = vld [vmem:[#allocation11 + $0x8] sm:$0xff]  ;;  %5253 = vst [vmem:[#allocation35_spill] sm:$0xff] %v4607_v13  ;;  %5255 = vst [vmem:[#allocation37_spill] sm:$0xff] %v4611_v15  ;;  %v4613_v16 = vld [vmem:[#allocation11 + $0x38] sm:$0xff] }
  0xc5   :  { %5250 = vst [vmem:[#allocation32_spill] sm:$0xff] %v4601_v10  ;;  %v4609_v14 = vld [vmem:[#allocation11 + $0x28] sm:$0xff]  ;;  %5256 = vst [vmem:[#allocation38_spill] sm:$0xff] %v4613_v16  ;;  %v4628_v19 = vld [vmem:[%s5213_s7 + $0x1] ss:$0 sm:$0xff] }
  0xc6   :  { %5254 = vst [vmem:[#allocation36_spill] sm:$0xff] %v4609_v14  ;;  %v4618_v17 = vld [vmem:[%s5212_s6] ss:$0 sm:$0xff]  ;;  %v4630_v20 = vld [vmem:[#allocation13] sm:$0xff]  ;;  %v4634_v22 = vld [vmem:[#allocation13 + $0x10] sm:$0xff] }
  0xc7   :  { %v4623_v18 = vld [vmem:[%s5213_s7] ss:$0 sm:$0xff]  ;;  %v4636_v23 = vld [vmem:[#allocation13 + $0x18] sm:$0xff]  ;;  %v4638_v24 = vld [vmem:[#allocation13 + $0x20] sm:$0xff] }
  0xc8   :  { %v4632_v21 = vld [vmem:[#allocation13 + $0x8] sm:$0xff]  ;;  %v4642_v26 = vld [vmem:[#allocation13 + $0x30] sm:$0xff]  ;;  %v4644_v27 = vld [vmem:[#allocation13 + $0x38] sm:$0xff] }
  0xc9   :  { %v4640_v25 = vld [vmem:[#allocation13 + $0x28] sm:$0xff]  ;;  %v4651_v29 = vld [vmem:[#allocation14] sm:$0xff]  ;;  %v4655_v31 = vld [vmem:[#allocation14 + $0x10] sm:$0xff] }
  0xca   :  { %v4649_v28 = vld [vmem:[%s5215_s9] ss:$0 sm:$0xff]  ;;  %v4657_v32 = vld [vmem:[#allocation14 + $0x18] sm:$0xff]  ;;  %v4659_v33 = vld [vmem:[#allocation14 + $0x20] sm:$0xff] }
  0xcb   :  { %v4653_v30 = vld [vmem:[#allocation14 + $0x8] sm:$0xff]  ;;  %v4663_v35 = vld [vmem:[#allocation14 + $0x30] sm:$0xff]  ;;  %v4665_v36 = vld [vmem:[#allocation14 + $0x38] sm:$0xff] }
  0xcc   :  { %v4661_v34 = vld [vmem:[#allocation14 + $0x28] sm:$0xff]  ;;  %5257 = vst [vmem:[#allocation39_spill] sm:$0xff] %v4663_v35  ;;  %5258 = vst [vmem:[#allocation40_spill] sm:$0xff] %v4665_v36  ;;  %v4667_v37 = vld [vmem:[#allocation16] sm:$0xff] }
  0xcd   :  { %v4669_v38 = vld [vmem:[#allocation16 + $0x8] sm:$0xff]  ;;  %v4671_v39 = vld [vmem:[#allocation16 + $0x10] sm:$0xff]  ;;  %v4673_v40 = vld [vmem:[#allocation16 + $0x18] sm:$0xff] }
  0xce   :  { %v4675_v41 = vld [vmem:[#allocation16 + $0x20] sm:$0xff]  ;;  %v4677_v42 = vld [vmem:[#allocation16 + $0x28] sm:$0xff]  ;;  %v4679_v43 = vld [vmem:[#allocation16 + $0x30] sm:$0xff] }
  0xcf   :  { %v4681_v44 = vld [vmem:[#allocation16 + $0x38] sm:$0xff]  ;;  %v4686_v45 = vld [vmem:[%s5218_s12] ss:$0 sm:$0xff]  ;;  %v4688_v46 = vld [vmem:[#allocation17] sm:$0xff] }
  0xd0   :  { %5259 = vst [vmem:[#allocation41_spill] sm:$0xff] %v4686_v45  ;;  %5260 = vst [vmem:[#allocation42_spill] sm:$0xff] %v4688_v46  ;;  %v4690_v47 = vld [vmem:[#allocation17 + $0x8] sm:$0xff]  ;;  %v4692_v48 = vld [vmem:[#allocation17 + $0x10] sm:$0xff]  ;;  %v4725_v45 = vmov 0.0  }
  0xd1   :  { %5261 = vst [vmem:[#allocation43_spill] sm:$0xff] %v4690_v47  ;;  %5262 = vst [vmem:[#allocation44_spill] sm:$0xff] %v4692_v48  ;;  %v4694_v49 = vld [vmem:[#allocation17 + $0x18] sm:$0xff]  ;;  %v4696_v50 = vld [vmem:[#allocation17 + $0x20] sm:$0xff]  ;;  %v4731_v47 = vmov 0.0  }
  0xd2   :  { %5263 = vst [vmem:[#allocation45_spill] sm:$0xff] %v4694_v49  ;;  %5264 = vst [vmem:[#allocation46_spill] sm:$0xff] %v4696_v50  ;;  %v4698_v51 = vld [vmem:[#allocation17 + $0x28] sm:$0xff]  ;;  %v4700_v52 = vld [vmem:[#allocation17 + $0x30] sm:$0xff]  ;;  %v4729_v50 = vmov 0.0  }
  0xd3   :  { %5265 = vst [vmem:[#allocation47_spill] sm:$0xff] %v4698_v51  ;;  %5266 = vst [vmem:[#allocation48_spill] sm:$0xff] %v4700_v52  ;;  %v4702_v53 = vld [vmem:[#allocation17 + $0x38] sm:$0xff]  ;;  %v4704_v54 = vld [vmem:[#allocation19] sm:$0xff]  ;;  %v4727_v51 = vmov 0.0  }
  0xd4   :  { %5267 = vst [vmem:[#allocation49_spill] sm:$0xff] %v4702_v53  ;;  %5268 = vst [vmem:[#allocation50_spill] sm:$0xff] %v4704_v54  ;;  %v4706_v55 = vld [vmem:[#allocation19 + $0x8] sm:$0xff]  ;;  %v4708_v56 = vld [vmem:[#allocation19 + $0x10] sm:$0xff] }
  0xd5   :  { %5269 = vst [vmem:[#allocation51_spill] sm:$0xff] %v4706_v55  ;;  %5270 = vst [vmem:[#allocation52_spill] sm:$0xff] %v4708_v56  ;;  %v4710_v57 = vld [vmem:[#allocation19 + $0x18] sm:$0xff]  ;;  %v4712_v58 = vld [vmem:[#allocation19 + $0x20] sm:$0xff] }
  0xd6   :  { %5271 = vst [vmem:[#allocation53_spill] sm:$0xff] %v4710_v57  ;;  %5272 = vst [vmem:[#allocation54_spill] sm:$0xff] %v4712_v58  ;;  %v4714_v59 = vld [vmem:[#allocation19 + $0x28] sm:$0xff]  ;;  %v4716_v60 = vld [vmem:[#allocation19 + $0x30] sm:$0xff] }
  0xd7   :  { %5273 = vst [vmem:[#allocation55_spill] sm:$0xff] %v4714_v59  ;;  %5274 = vst [vmem:[#allocation56_spill] sm:$0xff] %v4716_v60  ;;  %v4718_v61 = vld [vmem:[#allocation19 + $0x38] sm:$0xff]  ;;  %v4723_v62 = vld [vmem:[%s5221_s15] ss:$0 sm:$0xff]  ;;  %s4749_s15 = smov 0  }
  0xd8   :  { %5275 = vst [vmem:[#allocation57_spill] sm:$0xff] %v4718_v61  ;;  %5276 = vst [vmem:[#allocation58_spill] sm:$0xff] %v4723_v62  ;;  %v259_v63 = vld [vmem:[#allocation10] sm:$0xff]   ;;  %v260_v0 = vld [vmem:[#allocation10 + $0x8] sm:$0xff]  }
  0xd9   :  { %v261_v6 = vld [vmem:[#allocation10 + $0x10] sm:$0xff]   ;;  %v262_v5 = vld [vmem:[#allocation10 + $0x18] sm:$0xff]   ;;  %v263_v53 = vld [vmem:[#allocation10 + $0x20] sm:$0xff]  }
  0xda   :  { %v264_v52 = vld [vmem:[#allocation10 + $0x28] sm:$0xff]   ;;  %v265_v49 = vld [vmem:[#allocation10 + $0x30] sm:$0xff]   ;;  %v266_v48 = vld [vmem:[#allocation10 + $0x38] sm:$0xff]  }
  0xdb LB: > { %v5277_v1 = vld [vmem:[#allocation28_spill] sm:$0xff]  ;;  %5278 = vst [vmem:[#allocation59_spill] sm:$0xff] %v4286_v48  ;;  %5279 = vst [vmem:[#allocation60_spill] sm:$0xff] %v4290_v49  ;;  %v5280_v9 = vld [vmem:[#allocation31_spill] sm:$0xff]  ;;  %vm360_vm0 = vcmask 261120   ;;  %s3068_s10 = sadd.s32 4294967295, %s4318_s15  ;;  %v4270_v45 = vphi %v4725_v45, %v2952_v45   ;;  %s4318_s15 = sphi %s4749_s15, %s272_s15   ;;  %v4314_v63 = vphi %v259_v63, %v4998_v63   ;;  %v4310_v0 = vphi %v260_v0, %v5320_v0   ;;  %v4306_v6 = vphi %v261_v6, %v5010_v6   ;;  %v4302_v5 = vphi %v262_v5, %v5319_v5   ;;  %v4298_v53 = vphi %v263_v53, %v2989_v53   ;;  %v4294_v52 = vphi %v264_v52, %v2991_v52   ;;  %v4290_v49 = vphi %v265_v49, %v2993_v49   ;;  %v4286_v48 = vphi %v266_v48, %v2995_v48   ;;  %v4282_v47 = vphi %v4731_v47, %v2949_v47   ;;  %v4278_v50 = vphi %v4729_v50, %v2950_v50   ;;  %v4274_v51 = vphi %v4727_v51, %v2951_v51  }
  0xdc   : > { %v5281_v10 = vld [vmem:[#allocation32_spill] sm:$0xff]  ;;  %v5282_v13 = vld [vmem:[#allocation35_spill] sm:$0xff]  ;;  %v5284_v11 = vld [vmem:[#allocation33_spill] sm:$0xff]  ;;  %p289_p7 = scmp.gt.s32.totalorder %s3068_s10, 0  ;;  %3335 = vmatprep.mubr.msk.f32.mxu0 %vm360_vm0, %v4314_v63  ;;  %3349 = vmatprep.mubr.msk.f32.mxu1 %vm360_vm0, %v4314_v63  ;;  %p292_p8 = scmp.eq.s32.totalorder %s4318_s15, 0  ;;  %vm313_vm1 = vcmask 130112  }
  0xdd   : > { %v3607_v62 = vpack.c.bf16 %v5281_v10, %v5280_v9  ;;  %v5283_v14 = vld [vmem:[#allocation36_spill] sm:$0xff]  ;;  %v5285_v12 = vld [vmem:[#allocation34_spill] sm:$0xff]  ;;  %v5286_v15 = vld [vmem:[#allocation37_spill] sm:$0xff]  ;;  %v302_v9 = vlaneseq  ;;  %s3067_s5 = sshll.u32 %s4318_s15, 1  ;;  %vm324_vm2 = vcmask 1041409   ;;  %vm561_vm4 = vcmask 130048  }
  0xde   : > { %v3615_v46 = vpack.c.bf16 %v5283_v14, %v5282_v13  ;;  %v3611_v61 = vpack.c.bf16 %v5285_v12, %v5284_v11  ;;  %v5287_v16 = vld [vmem:[#allocation38_spill] sm:$0xff]  ;;  %s5325_s10 = smov (!%p289_p7, %s3068_s10), 0  ;;  %s286_s24 = scalar_lea.vmem [#allocation8], %s3067_s5  ;;  %vm2978_vm5 = vcmask 123904  }
  0xdf   : > { %v3619_v60 = vpack.c.bf16 %v5287_v16, %v5286_v15  ;;  %3608 = vmatprep.subr.bf16.mxu0 %v3607_v62  ;;  %s291_s19 = sld [smem:[#allocation3 + %s5325_s10]]  ;;  %v303_v10 = vand.u32 127, %v302_v9  ;;  %v305_v11 = vshrl.u32 %v302_v9, 7  ;;  %s4334_s25 = smov 32  }
  0xe0   : > { %3616 = vmatprep.subr.bf16.mxu1 %v3615_v46  ;;  %3610 = vmatpush3.bf16.msra.mxu0 %v3607_v62  ;;  %s4335_s3 = smov 96   ;;  %s2977_s18 = scalar_lea.vmem [#allocation20], %s3067_s5 }
  0xe1   : > { %3618 = vmatpush3.bf16.msra.mxu1 %v3615_v46  ;;  %3612 = vmatprep.subr.bf16.mxu0 %v3611_v61  ;;  %v4795_v62 = vsub.s32 %v303_v10, %v305_v11  ;;  %v308_v46 = vadd.s32 4294967288, %v303_v10  ;;  %v330_v13 = vsub.s32 0, %v305_v11  ;;  %s272_s15 = sadd.s32 1, %s4318_s15  }
  0xe2   : > { %3620 = vmatprep.subr.bf16.mxu1 %v3619_v60  ;;  %p5155_p11 = scmp.ge.s32.totalorder %s272_s15, 7  }
  0xe3   : > { %5288 = vst [vmem:[#allocation61_spill] sm:$0xff] %v4795_v62  ;;  %v4807_v9 = vsub.s32 %v308_v46, %v305_v11  ;;  %v318_v10 = vrot.slane %v4274_v51, %v4795_v62  ;;  %v287_v51 = vld [vmem:[%s286_s24] sm:$0x3]  ;;  %s4337_s0 = smov (%p5155_p11), [#allocation20]  }
  0xe4   : > { %3614 = vmatpush3.bf16.msra.mxu0 %v3611_v61  ;;  %s3005_s11 = sshll.u32 (%p5155_p11), %s4337_s0, 4  ;;  %s3006_s11 = int_to_ptr.vmem [resolvable:$true] %s3005_s11 }
  0xe5   : > { %3622 = vmatpush3.bf16.msra.mxu1 %v3619_v60  ;;  %v307_v60 = vrot.slane %v4282_v47, %v4795_v62  ;;  %5289 = vst [vmem:[#allocation62_spill] sm:$0xff] %v4807_v9  ;;  %p293_p9 = scmp.gt.s32.totalorder %s291_s19, 0  ;;  %v312_v61 = vrot.slane %v4278_v50, %v4807_v9  ;;  %v322_v12 = vrot.slane %v4270_v45, %v4807_v9  ;;  %v341_v45 = vsub.s32 1, %v305_v11  ;;  %s4180_s23 = scalar_lea.vmem (%p5155_p11), %s3006_s11, 224 }
  0xe6   :  { %p4181_p12 = scmp.ne.s32.totalorder (%p5155_p11), %s3006_s11, %s4180_s23  ;;  %p4185_p13 = scmp.lt.s32.totalorder (%p5155_p11), %s3006_s11, %s3006_s11 }
  0xe7   : > { %3336 = vmatmul.mubr.msk.f32.vlgmr.msra.gmra.mrb[0].mxu0 %vm360_vm0, %v4310_v0  ;;  %p294_p10 = por %p293_p9, %p292_p8  ;;  %v314_v47 = vsel %vm313_vm1, %v312_v61, %v307_v60  ;;  %v323_v46 = vsel %vm313_vm1, %v322_v12, %v318_v10  ;;  %p4186_p0 = scmp.lt.s32.totalorder (%p5155_p11), %s4180_s23, %s4180_s23 }
  0xe8   : > { %3350 = vmatmul.mubr.msk.f32.vlgmr.msra.gmra.mrb[0].mxu1 %vm360_vm0, %v4310_v0  ;;  %3338 = vmatprep.mubr.msk.f32.mxu0 %vm360_vm0, %v4306_v6  ;;  %v325_v50 = vsel %vm324_vm2, %v323_v46, %v314_v47 }
  0xe9   : > { %3352 = vmatprep.mubr.msk.f32.mxu1 %vm360_vm0, %v4306_v6  ;;  %s295_s29 = scalar_select %p294_p10, 1, 0 }
  0xea   :  { %p4187_p1 = por (%p5155_p11), %p4186_p0, %p4185_p13 }
  0xeb   : > { %3339 = vmatmul.mubr.msk.f32.gmra.mrb[2].mxu0 %vm360_vm0, %v4302_v5  ;;  %v296_v14 = vstv %s295_s29 }
  0xec   : > { %3353 = vmatmul.mubr.msk.f32.gmra.mrb[2].mxu1 %vm360_vm0, %v4302_v5  ;;  %vm297_vm3 = vcmp.eq.s32.totalorder %v296_v14, 1  ;;  %3359 = vmatprep.mubr.msk.f32.mxu0 %vm561_vm4, %v4578_v3  ;;  %p4188_p2 = pnand (%p5155_p11), %p4187_p1, %p4181_p12 }
  0xed   : > { %v327_v15 = vsel %vm297_vm3, %v287_v51, %v325_v50  ;;  %3366 = vmatprep.mubr.msk.f32.mxu1 %vm561_vm4, %v4578_v3 }
  0xee   : > { %v331_v16 = vrot.slane %v327_v15, %v330_v13  ;;  %v342_v9 = vrot.slane %v327_v15, %v341_v45 }
  0xf0   : > { %333 = vbcast.lane.b32.xlu0 %v331_v16, 256  ;;  %344 = vbcast.lane.b32.xlu1 %v342_v9, 256 }
  0xf4   : > { %337 = vbcast.lane.b32.xlu0 %v331_v16, 264  ;;  %348 = vbcast.lane.b32.xlu1 %v342_v9, 264 }
  0xf8   : > { %1436 = vrot.lane.b32.xlu0 %v4314_v63, %s4334_s25 }
  0xfc   : > { %1438 = vrot.lane.b32.xlu0 %v4310_v0, %s4334_s25 }
 0x100   : > { %1440 = vrot.lane.b32.xlu0 %v4306_v6, %s4334_s25 }
 0x104   : > { %1442 = vrot.lane.b32.xlu0 %v4302_v5, %s4334_s25 }
 0x162   : > { %v4834_v11 = vpop.permute.xlu0 %333  ;;  %v4836_v12 = vpop.permute.xlu1 %344 }
 0x163   : > { %v356_v10 = vmul.f32 %v4592_v7, %v4834_v11  ;;  %v468_v61 = vmul.f32 %v4597_v8, %v4834_v11  ;;  %v358_v59 = vmul.f32 %v4592_v7, %v4836_v12  ;;  %v470_v58 = vmul.f32 %v4597_v8, %v4836_v12 }
 0x166   : > { %v4838_v13 = vpop.permute.xlu0 %337  ;;  %v4844_v16 = vpop.permute.xlu1 %348 }
 0x167   : > { %v357_v14 = vmul.f32 %v4592_v7, %v4838_v13  ;;  %v469_v15 = vmul.f32 %v4597_v8, %v4838_v13  ;;  %v359_v45 = vmul.f32 %v4592_v7, %v4844_v16  ;;  %v471_v62 = vmul.f32 %v4597_v8, %v4844_v16 }
 0x1ba   : > { %v3337_v60 = vpop.f32.mrb[0].mxu0 }
 0x1bb   : > { %v3351_v9 = vpop.f32.mrb[0].mxu1  ;;  %v459_v47 = vadd.f32 %v3337_v60, %v357_v14  ;;  %v439_v51 = vpop.f32.mrb[1].mxu0 }
 0x1bc   : > { %v558_v46 = vadd.f32 %v3351_v9, %v469_v15  ;;  %v538_v50 = vpop.f32.mrb[1].mxu1  ;;  %v458_v57 = vadd.f32 %v439_v51, %v356_v10 }
 0x1bd   : > { %v557_v56 = vadd.f32 %v538_v50, %v468_v61 }
 0x1be   : > { %v3631_v55 = vpack.c.bf16 %v459_v47, %v458_v57  ;;  %v3340_v14 = vpop.f32.mrb[2].mxu0 }
 0x1bf   : > { %v3623_v54 = vpack.c.bf16 %v558_v46, %v557_v56  ;;  %v3354_v15 = vpop.f32.mrb[2].mxu1  ;;  %v461_v60 = vadd.f32 %v3340_v14, %v359_v45  ;;  %v449_v48 = vpop.f32.mrb[3].mxu0 }
 0x1c0   : > { %v560_v9 = vadd.f32 %v3354_v15, %v471_v62  ;;  %v548_v49 = vpop.f32.mrb[3].mxu1  ;;  %v460_v36 = vadd.f32 %v449_v48, %v358_v59  ;;  %v3643_v48 = vpack.c.bf16 %v4636_v23, %v4634_v22 }
 0x1c1   : > { %v559_v35 = vadd.f32 %v548_v49, %v470_v58  ;;  %3624 = vmatprep.subr.bf16.mxu0 %v3623_v54  ;;  %v3651_v49 = vpack.c.bf16 %v4644_v27, %v4642_v26 }
 0x1c2   : > { %3626 = vmatpush3.bf16.msra.mxu0 %v3623_v54  ;;  %v3635_v10 = vpack.c.bf16 %v461_v60, %v460_v36  ;;  %v3647_v36 = vpack.c.bf16 %v4640_v25, %v4638_v24 }
 0x1c3   : > { %v3627_v61 = vpack.c.bf16 %v560_v9, %v559_v35  ;;  %3632 = vmatprep.subr.bf16.mxu0 %v3631_v55  ;;  %v3639_v35 = vpack.c.bf16 %v4632_v21, %v4630_v20 }
 0x1c5   : > { %3360 = vmatmul.mubr.msk.f32.vlgmr.msra.gmra.mrb[4].mxu0 %vm561_vm4, %v4580_v4  ;;  %3628 = vmatprep.subr.bf16.mxu1 %v3627_v61 }
 0x1c6   : > { %3630 = vmatpush3.bf16.msra.mxu1 %v3627_v61  ;;  %3634 = vmatpush3.bf16.msra.mxu0 %v3631_v55 }
 0x1c7   : > { %3636 = vmatprep.subr.bf16.mxu1 %v3635_v10  ;;  %3373 = vmatprep.mubr.msk.f32.mxu0 %vm561_vm4, %v5277_v1 }
 0x1c8   : > { %3640 = vmatprep.subr.bf16.mxu0 %v3639_v35 }
 0x1c9   : > { %3367 = vmatmul.mubr.msk.f32.vlgmr.msra.gmra.mrb[4].mxu1 %vm561_vm4, %v4580_v4 }
 0x1ca   : > { %3638 = vmatpush3.bf16.msra.mxu1 %v3635_v10  ;;  %3380 = vmatprep.mubr.msk.f32.mxu1 %vm561_vm4, %v5277_v1 }
 0x1cb   : > { %3648 = vmatprep.subr.bf16.mxu1 %v3647_v36 }
 0x1cd   : > { %3374 = vmatmul.mubr.msk.f32.vlgmr.msra.gmra.mrb[4].mxu0 %vm561_vm4, %v4576_v2 }
 0x1ce   : > { %3642 = vmatpush3.bf16.msra.mxu0 %v3639_v35 }
 0x1cf   : > { %3644 = vmatprep.subr.bf16.mxu0 %v3643_v48 }
 0x1d1   : > { %3381 = vmatmul.mubr.msk.f32.vlgmr.msra.gmra.mrb[4].mxu1 %vm561_vm4, %v4576_v2 }
 0x1d2   : > { %3650 = vmatpush3.bf16.msra.mxu1 %v3647_v36  ;;  %3646 = vmatpush3.bf16.msra.mxu0 %v3643_v48 }
 0x1d3   : > { %3652 = vmatprep.subr.bf16.mxu1 %v3651_v49 }
 0x1d6   : > { %3654 = vmatpush3.bf16.msra.mxu1 %v3651_v49 }
 0x2a0   : > { %v3375_v54 = vpop.f32.mrb[4].mxu0 }
 0x2a1   : > { %v881_v55 = vadd.f32 %v3375_v54, %v4618_v17  ;;  %v790_v56 = vpop.f32.mrb[5].mxu0 }
 0x2a2   : > { %v880_v57 = vadd.f32 %v4618_v17, %v790_v56 }
 0x2a3   : > { %v3089_v58 = vmul.f32 -1.442695, %v881_v55 }
 0x2a4   : > { %v3088_v59 = vmul.f32 -1.442695, %v880_v57  ;;  %v3382_v62 = vpop.f32.mrb[4].mxu1 }
 0x2a5   : > { %3922 = vpow2.f32 %v3089_v58  ;;  %v883_v47 = vadd.f32 %v3382_v62, %v4618_v17  ;;  %v865_v46 = vpop.f32.mrb[5].mxu1  ;;  %v918_v62 = vmul.f32 %v4623_v18, %v4834_v11 }
 0x2a6   : > { %3924 = vpow2.f32 %v3088_v59  ;;  %v882_v51 = vadd.f32 %v4618_v17, %v865_v46 }
 0x2a7   : > { %v3091_v50 = vmul.f32 -1.442695, %v883_v47  ;;  %v1029_v47 = vmul.f32 %v4628_v19, %v4834_v11  ;;  %v1031_v11 = vmul.f32 %v4628_v19, %v4836_v12 }
 0x2a8   : > { %v3090_v45 = vmul.f32 -1.442695, %v882_v51 }
 0x2a9   : > { %3926 = vpow2.f32 %v3091_v50 }
 0x2aa   : > { %3928 = vpow2.f32 %v3090_v45 }
 0x2af   : > { %v3923_v14 = vpop.eup %3922 }
 0x2b0   : > { %v3925_v15 = vpop.eup %3924  ;;  %v897_v60 = vadd.f32 1.0, %v3923_v14 }
 0x2b1   : > { %v896_v9 = vadd.f32 1.0, %v3925_v15 }
 0x2b2   : > { %3930 = vrcp.f32 %v897_v60  ;;  %v921_v60 = vmul.f32 %v4623_v18, %v4844_v16 }
 0x2b3   : > { %v3927_v10 = vpop.eup %3926  ;;  %3932 = vrcp.f32 %v896_v9 }
 0x2b4   : > { %v3929_v61 = vpop.eup %3928  ;;  %v899_v35 = vadd.f32 1.0, %v3927_v10 }
 0x2b5   : > { %v898_v36 = vadd.f32 1.0, %v3929_v61 }
 0x2b6   : > { %3934 = vrcp.f32 %v899_v35 }
 0x2b7   : > { %3936 = vrcp.f32 %v898_v36  ;;  %v920_v36 = vmul.f32 %v4623_v18, %v4836_v12 }
 0x2bc   : > { %v4882_v48 = vpop.eup %3930 }
 0x2bd   : > { %v4884_v49 = vpop.eup %3932  ;;  %v909_v55 = vmul.f32 %v4310_v0, %v4882_v48 }
 0x2be   : > { %v908_v54 = vmul.f32 %v4314_v63, %v4884_v49 }
 0x2c0   : > { %v4890_v56 = vpop.eup %3934  ;;  %3391 = vmatprep.mubr.msk.f32.mxu0 %vm360_vm0, %v908_v54  ;;  %3405 = vmatprep.mubr.msk.f32.mxu1 %vm360_vm0, %v908_v54 }
 0x2c1   : > { %v4894_v57 = vpop.eup %3936  ;;  %3392 = vmatmul.mubr.msk.f32.vlgmr.msra.gmra.mrb[6].mxu0 %vm360_vm0, %v909_v55  ;;  %3406 = vmatmul.mubr.msk.f32.vlgmr.msra.gmra.mrb[6].mxu1 %vm360_vm0, %v909_v55  ;;  %v911_v63 = vmul.f32 %v4302_v5, %v4890_v56  ;;  %v1030_v5 = vmul.f32 %v4628_v19, %v4838_v13 }
 0x2c2   : > { %v910_v58 = vmul.f32 %v4306_v6, %v4894_v57  ;;  %v919_v6 = vmul.f32 %v4623_v18, %v4838_v13  ;;  %v1032_v13 = vmul.f32 %v4628_v19, %v4844_v16 }
 0x2c4   : > { %3394 = vmatprep.mubr.msk.f32.mxu0 %vm360_vm0, %v910_v58  ;;  %3408 = vmatprep.mubr.msk.f32.mxu1 %vm360_vm0, %v910_v58 }
 0x2c5   : > { %3395 = vmatmul.mubr.msk.f32.gmra.mrb[8].mxu0 %vm360_vm0, %v911_v63  ;;  %3409 = vmatmul.mubr.msk.f32.gmra.mrb[8].mxu1 %vm360_vm0, %v911_v63 }
 0x2c6   : > { %3415 = vmatprep.mubr.msk.f32.mxu0 %vm561_vm4, %v4578_v3  ;;  %3422 = vmatprep.mubr.msk.f32.mxu1 %vm561_vm4, %v4578_v3 }
 0x394   : > { %v3393_v0 = vpop.f32.mrb[6].mxu0  ;;  %v3407_v59 = vpop.f32.mrb[6].mxu1 }
 0x395   : > { %v1020_v46 = vadd.f32 %v3393_v0, %v919_v6  ;;  %v1119_v51 = vadd.f32 %v3407_v59, %v1030_v5  ;;  %v1000_v50 = vpop.f32.mrb[7].mxu0  ;;  %v1099_v45 = vpop.f32.mrb[7].mxu1 }
 0x396   : > { %v1019_v14 = vadd.f32 %v1000_v50, %v918_v62  ;;  %v1118_v15 = vadd.f32 %v1099_v45, %v1029_v47 }
 0x398   : > { %v3663_v9 = vpack.c.bf16 %v1020_v46, %v1019_v14  ;;  %v3655_v10 = vpack.c.bf16 %v1119_v51, %v1118_v15  ;;  %v3396_v61 = vpop.f32.mrb[8].mxu0  ;;  %v3410_v35 = vpop.f32.mrb[8].mxu1 }
 0x399   : > { %v1022_v54 = vadd.f32 %v3396_v61, %v921_v60  ;;  %v1121_v55 = vadd.f32 %v3410_v35, %v1032_v13  ;;  %v1010_v58 = vpop.f32.mrb[9].mxu0  ;;  %v1109_v63 = vpop.f32.mrb[9].mxu1  ;;  %v3671_v60 = vpack.c.bf16 %v4669_v38, %v4667_v37  ;;  %v3687_v13 = vpack.c.bf16 %v4677_v42, %v4675_v41 }
 0x39a   : > { %v1021_v6 = vadd.f32 %v1010_v58, %v920_v36  ;;  %v1120_v5 = vadd.f32 %v1109_v63, %v1031_v11  ;;  %3656 = vmatprep.subr.bf16.mxu0 %v3655_v10  ;;  %v3679_v35 = vpack.c.bf16 %v4653_v30, %v4651_v29  ;;  %v3695_v36 = vpack.c.bf16 %v4661_v34, %v4659_v33  ;;  %v5291_v58 = vld [vmem:[#allocation40_spill] sm:$0xff] }
 0x39b   : > { %3658 = vmatpush3.bf16.msra.mxu0 %v3655_v10  ;;  %v3691_v10 = vpack.c.bf16 %v4681_v44, %v4679_v43 }
 0x39c   : > { %v3667_v0 = vpack.c.bf16 %v1022_v54, %v1021_v6  ;;  %v3659_v16 = vpack.c.bf16 %v1121_v55, %v1120_v5  ;;  %3664 = vmatprep.subr.bf16.mxu0 %v3663_v9  ;;  %v3683_v54 = vpack.c.bf16 %v4657_v32, %v4655_v31  ;;  %v5290_v55 = vld [vmem:[#allocation39_spill] sm:$0xff]  ;;  %v1437_v6 = vpop.permute.xlu0 %1436  ;;  %v5292_v5 = vld [vmem:[#allocation60_spill] sm:$0xff] }
 0x39d   : > { %v3699_v63 = vpack.c.bf16 %v5291_v58, %v5290_v55 }
 0x39e   : > { %3416 = vmatmul.mubr.msk.f32.vlgmr.msra.gmra.mrb[10].mxu0 %vm561_vm4, %v4580_v4  ;;  %3660 = vmatprep.subr.bf16.mxu1 %v3659_v16 }
 0x39f   : > { %3662 = vmatpush3.bf16.msra.mxu1 %v3659_v16  ;;  %3666 = vmatpush3.bf16.msra.mxu0 %v3663_v9  ;;  %v3675_v9 = vpack.c.bf16 %v4673_v40, %v4671_v39 }
 0x3a0   : > { %3668 = vmatprep.subr.bf16.mxu1 %v3667_v0  ;;  %3429 = vmatprep.mubr.msk.f32.mxu0 %vm561_vm4, %v5277_v1  ;;  %v1439_v16 = vpop.permute.xlu0 %1438 }
 0x3a1   : > { %3672 = vmatprep.subr.bf16.mxu0 %v3671_v60 }
 0x3a2   : > { %3423 = vmatmul.mubr.msk.f32.vlgmr.msra.gmra.mrb[10].mxu1 %vm561_vm4, %v4580_v4 }
 0x3a3   : > { %3670 = vmatpush3.bf16.msra.mxu1 %v3667_v0  ;;  %3436 = vmatprep.mubr.msk.f32.mxu1 %vm561_vm4, %v5277_v1  ;;  %v5293_v0 = vld [vmem:[#allocation59_spill] sm:$0xff] }
 0x3a4   : > { %3688 = vmatprep.subr.bf16.mxu1 %v3687_v13 }
 0x3a6   : > { %3430 = vmatmul.mubr.msk.f32.vlgmr.msra.gmra.mrb[10].mxu0 %vm561_vm4, %v4576_v2 }
 0x3a7   : > { %3674 = vmatpush3.bf16.msra.mxu0 %v3671_v60  ;;  %3447 = vmatprep.mubr.msk.f32.mxu0 %vm360_vm0, %v4298_v53 }
 0x3a8   : > { %3676 = vmatprep.subr.bf16.mxu0 %v3675_v9 }
 0x3aa   : > { %3437 = vmatmul.mubr.msk.f32.vlgmr.msra.gmra.mrb[10].mxu1 %vm561_vm4, %v4576_v2 }
 0x3ab   : > { %3690 = vmatpush3.bf16.msra.mxu1 %v3687_v13  ;;  %3475 = vmatprep.mubr.msk.f32.mxu1 %vm360_vm0, %v4298_v53  ;;  %v1454_v13 = vsub.f32 1.0, %v4894_v57 }
 0x3ac   : > { %3692 = vmatprep.subr.bf16.mxu1 %v3691_v10  ;;  %3678 = vmatpush3.bf16.msra.mxu0 %v3675_v9 }
 0x3ad   : > { %3680 = vmatprep.subr.bf16.mxu0 %v3679_v35 }
 0x3af   : > { %3694 = vmatpush3.bf16.msra.mxu1 %v3691_v10  ;;  %3448 = vmatmul.mubr.msk.f32.vlgmr.msra.gmra.mrb[12].mxu0 %vm360_vm0, %v4294_v52 }
 0x3b0   : > { %3696 = vmatprep.subr.bf16.mxu1 %v3695_v36  ;;  %3682 = vmatpush3.bf16.msra.mxu0 %v3679_v35 }
 0x3b1   : > { %3450 = vmatprep.mubr.msk.f32.mxu0 %vm360_vm0, %v5292_v5  ;;  %3684 = vmatprep.subr.bf16.mxu0 %v3683_v54 }
 0x3b2   : > { %3476 = vmatmul.mubr.msk.f32.vlgmr.msra.gmra.mrb[12].mxu1 %vm360_vm0, %v4294_v52 }
 0x3b3   : > { %3698 = vmatpush3.bf16.msra.mxu1 %v3695_v36  ;;  %3478 = vmatprep.mubr.msk.f32.mxu1 %vm360_vm0, %v5292_v5  ;;  %v1455_v36 = vsub.f32 1.0, %v4890_v56 }
 0x3b4   : > { %3451 = vmatmul.mubr.msk.f32.gmra.mrb[14].mxu0 %vm360_vm0, %v5293_v0  ;;  %3700 = vmatprep.subr.bf16.mxu1 %v3699_v63 }
 0x3b5   : > { %3686 = vmatpush3.bf16.msra.mxu0 %v3683_v54 }
 0x3b6   : > { %3479 = vmatmul.mubr.msk.f32.gmra.mrb[14].mxu1 %vm360_vm0, %v5293_v0 }
 0x3b7   : > { %3702 = vmatpush3.bf16.msra.mxu1 %v3699_v63 }
 0x479   : > { %v3431_v12 = vpop.f32.mrb[10].mxu0 }
 0x47a   : > { %v1429_v59 = vadd.f32 %v3431_v12, %v4649_v28  ;;  %v1338_v62 = vpop.f32.mrb[11].mxu0  ;;  %v1453_v12 = vsub.f32 1.0, %v4882_v48 }
 0x47b   : > { %v1428_v47 = vadd.f32 %v4649_v28, %v1338_v62  ;;  %v1449_v62 = vmul.f32 %v4882_v48, %v1439_v16 }
 0x47c   : > { %3938 = vtanh.f32 %v1429_v59 }
 0x47d   : > { %v3438_v46 = vpop.f32.mrb[10].mxu1  ;;  %3940 = vtanh.f32 %v1428_v47 }
 0x47e   : > { %v1413_v51 = vpop.f32.mrb[11].mxu1  ;;  %v1431_v45 = vadd.f32 %v3438_v46, %v4649_v28 }
 0x47f   : > { %v1430_v50 = vadd.f32 %v4649_v28, %v1413_v51  ;;  %v1452_v51 = vsub.f32 1.0, %v4884_v49 }
 0x481   : > { %3942 = vtanh.f32 %v1430_v50  ;;  %v1441_v50 = vpop.permute.xlu0 %1440 }
 0x482   : > { %3944 = vtanh.f32 %v1431_v45  ;;  %v1450_v10 = vmul.f32 %v4894_v57, %v1441_v50 }
 0x485   : > { %v1443_v48 = vpop.permute.xlu0 %1442 }
 0x486   : > { %v3939_v14 = vpop.eup %3938 }
 0x487   : > { %1462 = vrot.lane.b32.xlu1 %v3939_v14, %s4334_s25  ;;  %v3941_v15 = vpop.eup %3940  ;;  %v1448_v14 = vmul.f32 %v4884_v49, %v1437_v6  ;;  %v1451_v49 = vmul.f32 %v4890_v56, %v1443_v48 }
 0x48b   : > { %1460 = vrot.lane.b32.xlu1 %v3941_v15, %s4334_s25  ;;  %v3943_v61 = vpop.eup %3942 }
 0x48c   : > { %v3945_v11 = vpop.eup %3944 }
 0x48f   : > { %1464 = vrot.lane.b32.xlu1 %v3943_v61, %s4334_s25 }
 0x493   : > { %1466 = vrot.lane.b32.xlu1 %v3945_v11, %s4334_s25 }
 0x4f9   : > { %v1463_v59 = vpop.permute.xlu1 %1462 }
 0x4fa   : > { %v1473_v47 = vmul.f32 %v1463_v59, %v1453_v12 }
 0x4fc   : > { %v1477_v46 = vadd.f32 %v1473_v47, %v1449_v62 }
 0x4fd   : > { %v1461_v45 = vpop.permute.xlu1 %1460 }
 0x4fe   : > { %v1472_v15 = vmul.f32 %v1461_v45, %v1452_v51  ;;  %1583 = vrot.lane.b32.xlu1 %v1477_v46, %s4335_s3 }
 0x500   : > { %v1476_v60 = vadd.f32 %v1472_v15, %v1448_v14 }
 0x501   : > { %v1465_v9 = vpop.permute.xlu1 %1464 }
 0x502   : > { %v1474_v61 = vmul.f32 %v1465_v9, %v1454_v13  ;;  %1581 = vrot.lane.b32.xlu0 %v1476_v60, %s4335_s3  ;;  %v5294_v60 = vld [vmem:[#allocation50_spill] sm:$0xff]  ;;  %v5295_v13 = vld [vmem:[#allocation51_spill] sm:$0xff] }
 0x503   : > { %v3719_v9 = vpack.c.bf16 %v5295_v13, %v5294_v60 }
 0x504   : > { %v1478_v35 = vadd.f32 %v1474_v61, %v1450_v10  ;;  %v5296_v10 = vld [vmem:[#allocation54_spill] sm:$0xff]  ;;  %v5297_v61 = vld [vmem:[#allocation55_spill] sm:$0xff] }
 0x505   : > { %v1467_v11 = vpop.permute.xlu1 %1466  ;;  %v3735_v48 = vpack.c.bf16 %v5297_v61, %v5296_v10 }
 0x506   : > { %v1475_v54 = vmul.f32 %v1467_v11, %v1455_v36  ;;  %1585 = vrot.lane.b32.xlu0 %v1478_v35, %s4335_s3  ;;  %v5298_v35 = vld [vmem:[#allocation52_spill] sm:$0xff]  ;;  %v5299_v36 = vld [vmem:[#allocation53_spill] sm:$0xff] }
 0x507   : > { %v3723_v11 = vpack.c.bf16 %v5299_v36, %v5298_v35 }
 0x508   : > { %v1479_v55 = vadd.f32 %v1475_v54, %v1451_v49  ;;  %v5300_v49 = vld [vmem:[#allocation56_spill] sm:$0xff]  ;;  %v5301_v54 = vld [vmem:[#allocation57_spill] sm:$0xff] }
 0x50a   : > { %1587 = vrot.lane.b32.xlu1 %v1479_v55, %s4335_s3  ;;  %2856 = vrot.lane.b32.xlu0 %v4298_v53, %s4334_s25  ;;  %v3739_v55 = vpack.c.bf16 %v5301_v54, %v5300_v49 }
 0x50e   : > { %2858 = vrot.lane.b32.xlu1 %v4294_v52, %s4334_s25  ;;  %2860 = vrot.lane.b32.xlu0 %v5292_v5, %s4334_s25 }
 0x512   : > { %2862 = vrot.lane.b32.xlu1 %v5293_v0, %s4334_s25 }
 0x570   : > { %v5000_v56 = vpop.permute.xlu1 %1583  }
 0x574   : > { %v4998_v63 = vpop.permute.xlu0 %1581  }
 0x575   : > { %3461 = vmatprep.mubr.msk.f32.mxu0 %vm360_vm0, %v4998_v63  ;;  %3489 = vmatprep.mubr.msk.f32.mxu1 %vm360_vm0, %v4998_v63 }
 0x576   : > { %3462 = vmatmul.mubr.msk.f32.vlgmr.msra.gmra.mrb[12].mxu0 %vm360_vm0, %v5000_v56  ;;  %3490 = vmatmul.mubr.msk.f32.vlgmr.msra.gmra.mrb[12].mxu1 %vm360_vm0, %v5000_v56 }
 0x578   : > { %v5010_v6 = vpop.permute.xlu0 %1585  }
 0x579   : > { %3464 = vmatprep.mubr.msk.f32.mxu0 %vm360_vm0, %v5010_v6  ;;  %3492 = vmatprep.mubr.msk.f32.mxu1 %vm360_vm0, %v5010_v6 }
 0x57c   : > { %v5016_v57 = vpop.permute.xlu1 %1587  }
 0x57d   : > { %3465 = vmatmul.mubr.msk.f32.gmra.mrb[14].mxu0 %vm360_vm0, %v5016_v57  ;;  %3493 = vmatmul.mubr.msk.f32.gmra.mrb[14].mxu1 %vm360_vm0, %v5016_v57 }
 0x57e   : > { %3499 = vmatprep.mubr.msk.f32.mxu0 %vm561_vm4, %v4578_v3  ;;  %3506 = vmatprep.mubr.msk.f32.mxu1 %vm561_vm4, %v4578_v3 }
 0x649   : > { %v3463_v58 = vpop.f32.mrb[12].mxu0  ;;  %v3491_v16 = vpop.f32.mrb[12].mxu1 }
 0x64a   : > { %v1663_v12 = vpop.f32.mrb[13].mxu0  ;;  %v1833_v59 = vpop.f32.mrb[13].mxu1 }
 0x64b   : > { %v3711_v62 = vpack.c.bf16 %v3463_v58, %v1663_v12  ;;  %v3703_v47 = vpack.c.bf16 %v3491_v16, %v1833_v59  ;;  %v5302_v58 = vld [vmem:[#allocation42_spill] sm:$0xff]  ;;  %v5303_v16 = vld [vmem:[#allocation43_spill] sm:$0xff] }
 0x64c   : > { %v3727_v12 = vpack.c.bf16 %v5303_v16, %v5302_v58  ;;  %v5304_v59 = vld [vmem:[#allocation46_spill] sm:$0xff] }
 0x64d   : > { %3704 = vmatprep.subr.bf16.mxu0 %v3703_v47 }
 0x64e   : > { %3706 = vmatpush3.bf16.msra.mxu0 %v3703_v47 }
 0x64f   : > { %3712 = vmatprep.subr.bf16.mxu0 %v3711_v62 }
 0x650   : > { %v3466_v46 = vpop.f32.mrb[14].mxu0  ;;  %v3494_v51 = vpop.f32.mrb[14].mxu1 }
 0x651   : > { %v1673_v50 = vpop.f32.mrb[15].mxu0  ;;  %v1843_v45 = vpop.f32.mrb[15].mxu1  ;;  %3500 = vmatmul.mubr.msk.f32.vlgmr.msra.gmra.mrb[16].mxu0 %vm561_vm4, %v4580_v4 }
 0x652   : > { %v3715_v14 = vpack.c.bf16 %v3466_v46, %v1673_v50  ;;  %v3707_v15 = vpack.c.bf16 %v3494_v51, %v1843_v45  ;;  %3714 = vmatpush3.bf16.msra.mxu0 %v3711_v62  ;;  %3513 = vmatprep.mubr.msk.f32.mxu0 %vm561_vm4, %v5277_v1  ;;  %v5305_v62 = vld [vmem:[#allocation47_spill] sm:$0xff]  ;;  %v5306_v51 = vld [vmem:[#allocation41_spill] sm:$0xff] }
 0x653   : > { %3720 = vmatprep.subr.bf16.mxu0 %v3719_v9  ;;  %v3743_v47 = vpack.c.bf16 %v5305_v62, %v5304_v59 }
 0x654   : > { %3708 = vmatprep.subr.bf16.mxu1 %v3707_v15 }
 0x655   : > { %3710 = vmatpush3.bf16.msra.mxu1 %v3707_v15 }
 0x656   : > { %3716 = vmatprep.subr.bf16.mxu1 %v3715_v14 }
 0x658   : > { %3507 = vmatmul.mubr.msk.f32.vlgmr.msra.gmra.mrb[16].mxu1 %vm561_vm4, %v4580_v4 }
 0x659   : > { %3514 = vmatmul.mubr.msk.f32.vlgmr.msra.gmra.mrb[16].mxu0 %vm561_vm4, %v4576_v2  ;;  %3718 = vmatpush3.bf16.msra.mxu1 %v3715_v14  ;;  %v5307_v14 = vmov %v5306_v51 }
 0x65a   : > { %3520 = vmatprep.mubr.msk.f32.mxu1 %vm561_vm4, %v5277_v1  ;;  %3736 = vmatprep.subr.bf16.mxu1 %v3735_v48 }
 0x65b   : > { %3722 = vmatpush3.bf16.msra.mxu0 %v3719_v9 }
 0x65c   : > { %3724 = vmatprep.subr.bf16.mxu0 %v3723_v11 }
 0x65f   : > { %3726 = vmatpush3.bf16.msra.mxu0 %v3723_v11 }
 0x660   : > { %3521 = vmatmul.mubr.msk.f32.vlgmr.msra.gmra.mrb[16].mxu1 %vm561_vm4, %v4576_v2  ;;  %3728 = vmatprep.subr.bf16.mxu0 %v3727_v12 }
 0x661   : > { %3738 = vmatpush3.bf16.msra.mxu1 %v3735_v48 }
 0x662   : > { %3740 = vmatprep.subr.bf16.mxu1 %v3739_v55 }
 0x665   : > { %3742 = vmatpush3.bf16.msra.mxu1 %v3739_v55 }
 0x666   : > { %3744 = vmatprep.subr.bf16.mxu1 %v3743_v47 }
 0x72c   : > { %v3515_v46 = vpop.f32.mrb[16].mxu0 }
 0x72d   : > { %v2159_v50 = vadd.f32 %v3515_v46, %v5306_v51  ;;  %v2068_v45 = vpop.f32.mrb[17].mxu0 }
 0x72e   : > { %v2158_v15 = vadd.f32 %v5307_v14, %v2068_v45 }
 0x72f   : > { %v3137_v60 = vmul.f32 -1.442695, %v2159_v50 }
 0x730   : > { %v3136_v13 = vmul.f32 -1.442695, %v2158_v15  ;;  %v5308_v15 = vld [vmem:[#allocation44_spill] sm:$0xff] }
 0x731   : > { %3946 = vpow2.f32 %v3137_v60  ;;  %v5309_v60 = vld [vmem:[#allocation45_spill] sm:$0xff] }
 0x732   : > { %3948 = vpow2.f32 %v3136_v13  ;;  %v3731_v13 = vpack.c.bf16 %v5309_v60, %v5308_v15 }
 0x733   : > { %v3522_v9 = vpop.f32.mrb[16].mxu1 }
 0x734   : > { %v2161_v10 = vadd.f32 %v3522_v9, %v5307_v14  ;;  %v2143_v61 = vpop.f32.mrb[17].mxu1  ;;  %v5310_v9 = vld [vmem:[#allocation48_spill] sm:$0xff] }
 0x735   : > { %v2160_v48 = vadd.f32 %v5307_v14, %v2143_v61 }
 0x736   : > { %v3139_v35 = vmul.f32 -1.442695, %v2161_v10  ;;  %v5311_v10 = vld [vmem:[#allocation49_spill] sm:$0xff] }
 0x737   : > { %v3138_v36 = vmul.f32 -1.442695, %v2160_v48  ;;  %v3747_v61 = vpack.c.bf16 %v5311_v10, %v5310_v9 }
 0x738   : > { %3950 = vpow2.f32 %v3139_v35 }
 0x739   : > { %3952 = vpow2.f32 %v3138_v36 }
 0x73b   : > { %v3947_v11 = vpop.eup %3946 }
 0x73c   : > { %v3949_v49 = vpop.eup %3948  ;;  %v2175_v54 = vadd.f32 1.0, %v3947_v11 }
 0x73d   : > { %v2174_v55 = vadd.f32 1.0, %v3949_v49 }
 0x73e   : > { %3954 = vrcp.f32 %v2175_v54 }
 0x73f   : > { %3956 = vrcp.f32 %v2174_v55 }
 0x742   : > { %v3951_v58 = vpop.eup %3950 }
 0x743   : > { %v3953_v16 = vpop.eup %3952  ;;  %v2177_v59 = vadd.f32 1.0, %v3951_v58 }
 0x744   : > { %v2176_v62 = vadd.f32 1.0, %v3953_v16 }
 0x745   : > { %3958 = vrcp.f32 %v2177_v59 }
 0x746   : > { %3960 = vrcp.f32 %v2176_v62 }
 0x748   : > { %v5054_v46 = vpop.eup %3954 }
 0x749   : > { %v5056_v51 = vpop.eup %3956  ;;  %v2187_v45 = vmul.f32 %v4294_v52, %v5054_v46 }
 0x74a   : > { %v2186_v50 = vmul.f32 %v4298_v53, %v5056_v51 }
 0x74c   : > { %3531 = vmatprep.mubr.msk.f32.mxu0 %vm360_vm0, %v2186_v50  ;;  %3559 = vmatprep.mubr.msk.f32.mxu1 %vm360_vm0, %v2186_v50  ;;  %v5312_v50 = vld [vmem:[#allocation58_spill] sm:$0xff] }
 0x74d   : > { %3532 = vmatmul.mubr.msk.f32.vlgmr.msra.gmra.mrb[18].mxu0 %vm360_vm0, %v2187_v45  ;;  %3560 = vmatmul.mubr.msk.f32.vlgmr.msra.gmra.mrb[18].mxu1 %vm360_vm0, %v2187_v45  ;;  %v5313_v15 = vmov %v5312_v50 }
 0x74e   : > { %3730 = vmatpush3.bf16.msra.mxu0 %v3727_v12  ;;  %3746 = vmatpush3.bf16.msra.mxu1 %v3743_v47 }
 0x74f   : > { %v5070_v53 = vpop.eup %3958  ;;  %3732 = vmatprep.subr.bf16.mxu0 %v3731_v13  ;;  %3748 = vmatprep.subr.bf16.mxu1 %v3747_v61 }
 0x750   : > { %v5072_v52 = vpop.eup %3960  ;;  %v2189_v35 = vmul.f32 %v5293_v0, %v5070_v53 }
 0x751   : > { %v2188_v48 = vmul.f32 %v5292_v5, %v5072_v52 }
 0x752   : > { %3734 = vmatpush3.bf16.msra.mxu0 %v3731_v13  ;;  %3750 = vmatpush3.bf16.msra.mxu1 %v3747_v61 }
 0x753   : > { %3534 = vmatprep.mubr.msk.f32.mxu0 %vm360_vm0, %v2188_v48  ;;  %3562 = vmatprep.mubr.msk.f32.mxu1 %vm360_vm0, %v2188_v48 }
 0x754   : > { %3535 = vmatmul.mubr.msk.f32.gmra.mrb[20].mxu0 %vm360_vm0, %v2189_v35  ;;  %3563 = vmatmul.mubr.msk.f32.gmra.mrb[20].mxu1 %vm360_vm0, %v2189_v35 }
 0x755   : > { %3545 = vmatprep.mubr.msk.f32.mxu0 %vm360_vm0, %v4998_v63  ;;  %3573 = vmatprep.mubr.msk.f32.mxu1 %vm360_vm0, %v4998_v63 }
 0x758   : > { %3546 = vmatmul.mubr.msk.f32.vlgmr.msra.gmra.mrb[18].mxu0 %vm360_vm0, %v5000_v56  ;;  %3574 = vmatmul.mubr.msk.f32.vlgmr.msra.gmra.mrb[18].mxu1 %vm360_vm0, %v5000_v56 }
 0x759   : > { %3548 = vmatprep.mubr.msk.f32.mxu0 %vm360_vm0, %v5010_v6  ;;  %3576 = vmatprep.mubr.msk.f32.mxu1 %vm360_vm0, %v5010_v6 }
 0x75c   : > { %3549 = vmatmul.mubr.msk.f32.gmra.mrb[20].mxu0 %vm360_vm0, %v5016_v57  ;;  %3577 = vmatmul.mubr.msk.f32.gmra.mrb[20].mxu1 %vm360_vm0, %v5016_v57 }
 0x75d   : > { %3583 = vmatprep.mubr.msk.f32.mxu0 %vm561_vm4, %v4578_v3  ;;  %3590 = vmatprep.mubr.msk.f32.mxu1 %vm561_vm4, %v4578_v3 }
 0x82b   : > { %v3547_v5 = vpop.f32.mrb[18].mxu0  ;;  %v3575_v0 = vpop.f32.mrb[18].mxu1 }
 0x82c   : > { %v2353_v12 = vpop.f32.mrb[19].mxu0  ;;  %v2523_v47 = vpop.f32.mrb[19].mxu1 }
 0x82d   : > { %v3759_v36 = vpack.c.bf16 %v3547_v5, %v2353_v12  ;;  %v3751_v11 = vpack.c.bf16 %v3575_v0, %v2523_v47  ;;  %v5314_v47 = vld [vmem:[#allocation29_spill] sm:$0xff] }
 0x82f   : > { %v3550_v49 = vpop.f32.mrb[20].mxu0  ;;  %v3578_v54 = vpop.f32.mrb[20].mxu1  ;;  %3752 = vmatprep.subr.bf16.mxu0 %v3751_v11 }
 0x830   : > { %v2363_v55 = vpop.f32.mrb[21].mxu0  ;;  %v2533_v58 = vpop.f32.mrb[21].mxu1  ;;  %3754 = vmatpush3.bf16.msra.mxu0 %v3751_v11 }
 0x831   : > { %v3763_v16 = vpack.c.bf16 %v3550_v49, %v2363_v55  ;;  %v3755_v59 = vpack.c.bf16 %v3578_v54, %v2533_v58  ;;  %3760 = vmatprep.subr.bf16.mxu0 %v3759_v36  ;;  %v2857_v11 = vpop.permute.xlu0 %2856 }
 0x833   : > { %3584 = vmatmul.mubr.msk.f32.vlgmr.msra.gmra.mrb[22].mxu0 %vm561_vm4, %v4580_v4  ;;  %3756 = vmatprep.subr.bf16.mxu1 %v3755_v59 }
 0x834   : > { %3758 = vmatpush3.bf16.msra.mxu1 %v3755_v59  ;;  %3762 = vmatpush3.bf16.msra.mxu0 %v3759_v36  ;;  %v2859_v36 = vpop.permute.xlu1 %2858  ;;  %v2872_v59 = vsub.f32 1.0, %v5056_v51 }
 0x835   : > { %3764 = vmatprep.subr.bf16.mxu1 %v3763_v16  ;;  %3597 = vmatprep.mubr.msk.f32.mxu0 %vm561_vm4, %v5277_v1  ;;  %v2861_v54 = vpop.permute.xlu0 %2860 }
 0x837   : > { %3591 = vmatmul.mubr.msk.f32.vlgmr.msra.gmra.mrb[22].mxu1 %vm561_vm4, %v4580_v4 }
 0x838   : > { %3766 = vmatpush3.bf16.msra.mxu1 %v3763_v16  ;;  %3604 = vmatprep.mubr.msk.f32.mxu1 %vm561_vm4, %v5277_v1  ;;  %v2863_v49 = vpop.permute.xlu1 %2862  ;;  %v2873_v16 = vsub.f32 1.0, %v5054_v46 }
 0x83b   : > { %3598 = vmatmul.mubr.msk.f32.vlgmr.msra.gmra.mrb[22].mxu0 %vm561_vm4, %v4576_v2 }
 0x83f   : > { %3605 = vmatmul.mubr.msk.f32.vlgmr.msra.gmra.mrb[22].mxu1 %vm561_vm4, %v4576_v2 }
 0x90e   : > { %v3599_v62 = vpop.f32.mrb[22].mxu0 }
 0x90f   : > { %v2849_v45 = vadd.f32 %v3599_v62, %v5312_v50  ;;  %v2758_v60 = vpop.f32.mrb[23].mxu0 }
 0x910   : > { %v2848_v13 = vadd.f32 %v5313_v15, %v2758_v60 }
 0x911   : > { %3962 = vtanh.f32 %v2849_v45  ;;  %v2875_v45 = vsub.f32 1.0, %v5070_v53 }
 0x912   : > { %3964 = vtanh.f32 %v2848_v13  ;;  %v3606_v9 = vpop.f32.mrb[22].mxu1  ;;  %v2874_v13 = vsub.f32 1.0, %v5072_v52 }
 0x913   : > { %v2851_v10 = vadd.f32 %v3606_v9, %v5313_v15  ;;  %v2833_v61 = vpop.f32.mrb[23].mxu1 }
 0x914   : > { %v2850_v48 = vadd.f32 %v5313_v15, %v2833_v61  ;;  %v2868_v61 = vmul.f32 %v5056_v51, %v2857_v11  ;;  %v4336_v51 = vmov 0  }
 0x915   : > { %3966 = vtanh.f32 %v2851_v10  ;;  %v2869_v10 = vmul.f32 %v5054_v46, %v2859_v36  ;;  %3921 = vset.pattern.permute.xlu0 %v4336_v51 }
 0x916   : > { %3968 = vtanh.f32 %v2850_v48 }
 0x91b   : > { %v3963_v35 = vpop.eup %3962 }
 0x91c   : > { %v3965_v5 = vpop.eup %3964  ;;  %2882 = vrot.lane.b32.xlu1 %v3963_v35, %s4334_s25 }
 0x91d   : > { %2880 = vrot.lane.b32.xlu0 %v3965_v5, %s4334_s25  ;;  %v2871_v5 = vmul.f32 %v5070_v53, %v2863_v49 }
 0x91f   : > { %v3967_v0 = vpop.eup %3966 }
 0x920   : > { %v3969_v12 = vpop.eup %3968  ;;  %2886 = vrot.lane.b32.xlu1 %v3967_v0, %s4334_s25  ;;  %v2870_v0 = vmul.f32 %v5072_v52, %v2861_v54 }
 0x921   : > { %2884 = vrot.lane.b32.xlu0 %v3969_v12, %s4334_s25 }
 0x925   : > { %2905 = vrot.lane.b32.xlu0 %v5314_v47, %s4334_s25 }
 0x98e   : > { %v2883_v55 = vpop.permute.xlu1 %2882 }
 0x98f   : > { %v2881_v58 = vpop.permute.xlu0 %2880  ;;  %v2893_v62 = vmul.f32 %v2883_v55, %v2873_v16 }
 0x990   : > { %v2892_v50 = vmul.f32 %v2881_v58, %v2872_v59 }
 0x991   : > { %v2897_v12 = vadd.f32 %v2893_v62, %v2869_v10 }
 0x992   : > { %v2887_v60 = vpop.permute.xlu1 %2886  ;;  %v2896_v47 = vadd.f32 %v2892_v50, %v2868_v61 }
 0x993   : > { %v2885_v9 = vpop.permute.xlu0 %2884  ;;  %v2895_v48 = vmul.f32 %v2887_v60, %v2875_v45  ;;  %v5315_v45 = vld [vmem:[#allocation30_spill] sm:$0xff] }
 0x994   : > { %v2894_v35 = vmul.f32 %v2885_v9, %v2874_v13 }
 0x995   : > { %v2899_v58 = vadd.f32 %v2895_v48, %v2871_v5  ;;  %v5316_v48 = vld [vmem:[#allocation61_spill] sm:$0xff]  ;;  %v5317_v5 = vld [vmem:[#allocation62_spill] sm:$0xff] }
 0x996   : > { %v2898_v16 = vadd.f32 %v2894_v35, %v2870_v0 }
 0x997   : > { %v2906_v55 = vpop.permute.xlu0 %2905 }
 0x998   : > { %v2909_v59 = vmul.f32 %v2906_v55, %v2897_v12  ;;  %v2908_v1 = vmul.f32 %v2906_v55, %v2896_v47  ;;  %v2911_v46 = vmul.f32 %v2906_v55, %v2899_v58  ;;  %v2910_v36 = vmul.f32 %v2906_v55, %v2898_v16 }
 0x99a   : > { %2918 = vrot.lane.b32.xlu0 %v2909_v59, %s4335_s3  ;;  %2916 = vrot.lane.b32.xlu1 %v2908_v1, %s4335_s3 }
 0x99e   : > { %2922 = vrot.lane.b32.xlu0 %v2911_v46, %s4335_s3  ;;  %2920 = vrot.lane.b32.xlu1 %v2910_v36, %s4335_s3 }
 0xa0c   : > { %v2919_v53 = vpop.permute.xlu0 %2918  ;;  %v2917_v52 = vpop.permute.xlu1 %2916 }
 0xa0d   : > { %v2931_v11 = vsel %vm360_vm0, %v2919_v53, 0.0  ;;  %v2928_v49 = vsel %vm360_vm0, %v2917_v52, 0.0 }
 0xa0e   : > { %2932 = vadd.xlane.f32.xlu0 %v2931_v11  ;;  %2929 = vadd.xlane.f32.xlu1 %v2928_v49 }
 0xa10   : > { %v2923_v54 = vpop.permute.xlu0 %2922  ;;  %v2921_v62 = vpop.permute.xlu1 %2920 }
 0xa11   : > { %v2937_v1 = vsel %vm360_vm0, %v2923_v54, 0.0  ;;  %v2934_v50 = vsel %vm360_vm0, %v2921_v62, 0.0 }
 0xa12   : > { %2938 = vadd.xlane.f32.xlu1 %v2937_v1  ;;  %2935 = vadd.xlane.f32.xlu0 %v2934_v50 }
 0xa23   : > { %2988 = vrot.lane.b32.xlu1 %v2896_v47, %s4335_s3 }
 0xa27   : > { %2990 = vrot.lane.b32.xlu1 %v2897_v12, %s4335_s3 }
 0xa28   : > { %2946 = vperm.xlu0 %3921, %v5315_v45  }
 0xa2b   : > { %2992 = vrot.lane.b32.xlu1 %v2898_v16, %s4335_s3 }
 0xa2f   : > { %2994 = vrot.lane.b32.xlu1 %v2899_v58, %s4335_s3 }
 0xa9b   : > { %v2930_v60 = vpop.xlane.xlu1 %2929  ;;  %v2933_v13 = vpop.xlane.xlu0 %2932 }
 0xa9f   : > { %v2939_v9 = vpop.xlane.xlu1 %2938  ;;  %v2936_v10 = vpop.xlane.xlu0 %2935 }
 0xaa3   : > { %v2989_v53 = vpop.permute.xlu1 %2988  }
 0xaa7   : > { %v2947_v61 = vpop.permute.xlu0 %2946  ;;  %v2991_v52 = vpop.permute.xlu1 %2990  }
 0xaa8   : > { %v2949_v47 = vadd.f32 %v2947_v61, %v2930_v60   ;;  %v2950_v50 = vadd.f32 %v2947_v61, %v2933_v13   ;;  %v2951_v51 = vadd.f32 %v2947_v61, %v2936_v10   ;;  %v2952_v45 = vadd.f32 %v2947_v61, %v2939_v9  }
 0xaa9   :  { %271 = sbr.rel (!%p5155_p11) target bundleno = 219 (0xdb), region = 141 }
 0xaaa   : > { %v2960_v35 = vrot.slane %v2949_v47, %v5316_v48  ;;  %v2964_v0 = vrot.slane %v2950_v50, %v5317_v5  ;;  %v2969_v12 = vrot.slane %v2951_v51, %v5316_v48  ;;  %v2973_v55 = vrot.slane %v2952_v45, %v5317_v5 }
 0xaab   : > { %v2993_v49 = vpop.permute.xlu1 %2992   ;;  %v5319_v5 = vmov %v5016_v57 }
 0xaac   : > { %v2965_v58 = vsel %vm313_vm1, %v2964_v0, %v2960_v35  ;;  %v2974_v16 = vsel %vm313_vm1, %v2973_v55, %v2969_v12  ;;  %v5320_v0 = vmov %v5000_v56 }
 0xaad   : > { %v2975_v59 = vsel %vm324_vm2, %v2974_v16, %v2965_v58 }
 0xaae   : > { %2979 = vst.msk [vmem:[%s2977_s18] sm:$0x3] %vm2978_vm5, %v2975_v59 }
 0xaaf   : > { %v2995_v48 = vpop.permute.xlu1 %2994  }
 0xab0   :  { %4191 = shalt.err (!%p4188_p2)
}
 0xab1   :  { %s5321_s26 = sld [smem:[#allocation66_spill]] }
 0xab7   :  { %s4192_s21 = scalar_lea.hbm %s5321_s26, 224 }
 0xab8   :  { %p4193_p3 = scmp.ne.s32.totalorder %s5321_s26, %s4192_s21  ;;  %p4196_p4 = scmp.lt.u32.totalorder %s4192_s21, %s5321_s26 }
 0xaba   :  { %p4198_p5 = pnand %p4196_p4, %p4193_p3 }
 0xabc   :  { %4201 = shalt.err (!%p4198_p5)
}
 0xabd   :  { %s5322_s4 = smov 2   ;;  %s5323_s2 = smov 32  }
 0xabe   :  { %3011 = dma.vmem_to_hbm [thread:$0]  %s3006_s11, 224, %s5321_s26, [#allocation5], %s5323_s2, %s5323_s2, %s5322_s4  }
 0xabf   :  { %4266 = dma.done.wait [#allocation5], 224  }
 0xac0   :  { %4267 = vsyncadd [#allocation5], 4294967072 }
 0xac1   :  { %3015 = vsyncpa [#allocation4], 1 }
 0xac2   :  { %3016 = vsyncpa [#allocation9], 1 }
 0xac3   :  { %3017 = vsyncpa [#allocation12], 1 }
 0xac4   :  { %3018 = vsyncpa [#allocation15], 1 }
 0xac5   :  { %3019 = vsyncpa [#allocation18], 1 }
 0xac6   :  { %3020 = vsyncpa [#allocation5], 1 }
 0xac7   :  { %3021 = vsyncpa [#allocation6], 1 }

</bundles_post_ra>
